<compile_context>
chip_gen: v7x
topology: tpu7x:2x2x1
jax: 0.10.0
libtpu: 0.0.40
codegen_flags: <defaults>
</compile_context>

<pallas_src>
import functools
import numpy as np
import jax
import jax.numpy as jnp
from jax import lax
from jax.experimental import pallas as pl
from jax.experimental.pallas import tpu as pltpu


def _build_tap_masks(D, H, W, r):
    """(27, D*H*W) f32 masks: 1 where the dilated-conv tap reads inside the
    volume, 0 where PyTorch zero-padding applies (compile-time constants)."""
    d = np.arange(D)[:, None, None]
    h = np.arange(H)[None, :, None]
    w = np.arange(W)[None, None, :]
    masks = []
    for kd in range(3):
        for kh in range(3):
            for kw in range(3):
                dd, dh, dw = (kd - 1) * r, (kh - 1) * r, (kw - 1) * r
                ok = ((d + dd >= 0) & (d + dd < D) &
                      (h + dh >= 0) & (h + dh < H) &
                      (w + dw >= 0) & (w + dw < W))
                masks.append(np.broadcast_to(ok, (D, H, W)).reshape(-1))
    return np.stack(masks).astype(np.float32)


def _single_layer_kernel(x_ref, scale_ref, shift_ref, w_ref, mask_ref, o_ref,
                         dup_ref, col_ref, *, D, H, W, r):
    # x_ref:     (1, C, DHW)   f32   one batch element, channels-first, flat spatial
    # scale_ref: (C, 1)        f32   gamma / sqrt(var + eps)
    # shift_ref: (C, 1)        f32   beta - mean * scale
    # w_ref:     (G, 27*C)     bf16  conv weight, K ordered (kd, kh, kw, c)
    # mask_ref:  (27, DHW)     f32   per-tap boundary masks
    # o_ref:     (1, C+G, DHW) f32   concatenated output (== NCDHW flattened)
    # dup_ref:   (C, 2*DHW)    f32   activation written twice (cyclic windows)
    # col_ref:   (27*C, DHW)   bf16  im2col buffer for the single fused matmul
    C = x_ref.shape[1]
    G = w_ref.shape[0]
    DHW = D * H * W
    HW = H * W

    # fused BatchNorm (affine folded into scale/shift) + ReLU, f32 math
    x = x_ref[0]                                               # (C, DHW)
    act = jnp.maximum(x * scale_ref[...] + shift_ref[...], 0.0)

    # Write the activation twice so every spatially-shifted window is a plain
    # contiguous lane slice (wrapped positions are zeroed by the tap masks).
    dup_ref[:, 0:DHW] = act
    dup_ref[:, DHW:2 * DHW] = act

    # Build the im2col matrix: one lane-shifted slice + mask multiply per tap.
    tap = 0
    for kd in range(3):
        for kh in range(3):
            for kw in range(3):
                off = ((kd - 1) * HW + (kh - 1) * W + (kw - 1)) * r
                k = off % DHW                                  # static Python int
                win = dup_ref[:, k:k + DHW]                    # (C, DHW) f32
                m = mask_ref[tap:tap + 1, :]                   # (1, DHW) f32
                col_ref[tap * C:(tap + 1) * C, :] = (win * m).astype(col_ref.dtype)
                tap += 1

    # Single fused MXU matmul: (G, 27*C) x (27*C, DHW) -> (G, DHW), f32 acc.
    conv = jnp.dot(w_ref[...], col_ref[...],
                   preferred_element_type=jnp.float32)

    # Write the concatenated (x, conv_out) block directly -> no XLA concat,
    # no transposes; all stores are full-lane (lane-dense) writes.
    o_ref[0, 0:C, :] = x
    o_ref[0, C:C + G, :] = conv.astype(o_ref.dtype)


def single_layer_forward(x_ncdhw, gamma, beta, conv_w,
                         drop_rate=0.0, dilation_rate=1, eps=1e-5):
    """Full SingleLayer forward. x_ncdhw: (N, C, D, H, W) like PyTorch."""
    N, C, D, H, W = x_ncdhw.shape
    G = conv_w.shape[0]
    r = int(dilation_rate)
    DHW = D * H * W

    # NCDHW flattened view (free reshape, no transpose).
    x2 = x_ncdhw.astype(jnp.float32).reshape(N, C, DHW)

    # One-pass training-mode BatchNorm3d stats (biased variance) over (N,D,H,W).
    # (Eval-mode running stats are not modeled; module is used in training mode.)
    cnt = N * DHW
    s = jnp.sum(x2, axis=(0, 2))
    ss = jnp.sum(x2 * x2, axis=(0, 2))
    mean = s / cnt
    var = jnp.maximum(ss / cnt - mean * mean, 0.0)
    inv_std = lax.rsqrt(var + eps)
    g32 = gamma.astype(jnp.float32)
    scale = (g32 * inv_std).reshape(C, 1)
    shift = (beta.astype(jnp.float32) - mean * g32 * inv_std).reshape(C, 1)

    # PyTorch conv weight (G, C, 3, 3, 3) -> (G, 27*C), K ordered (kd,kh,kw,c);
    # bf16 MXU operand.
    w_mat = jnp.transpose(conv_w.astype(jnp.float32),
                          (0, 2, 3, 4, 1)).reshape(G, 27 * C).astype(jnp.bfloat16)

    masks = jnp.asarray(_build_tap_masks(D, H, W, r))          # (27, DHW) f32

    kernel = functools.partial(_single_layer_kernel, D=D, H=H, W=W, r=r)

    out_flat = pl.pallas_call(
        kernel,
        out_shape=jax.ShapeDtypeStruct((N, C + G, DHW), jnp.float32),
        grid_spec=pltpu.PrefetchScalarGridSpec(
            num_scalar_prefetch=0,
            grid=(N,),  # keeps both v7x TensorCores busy when N >= 2
            in_specs=[
                pl.BlockSpec((1, C, DHW), lambda n: (n, 0, 0)),
                pl.BlockSpec((C, 1), lambda n: (0, 0)),
                pl.BlockSpec((C, 1), lambda n: (0, 0)),
                pl.BlockSpec((G, 27 * C), lambda n: (0, 0)),
                pl.BlockSpec((27, DHW), lambda n: (0, 0)),
            ],
            out_specs=pl.BlockSpec((1, C + G, DHW), lambda n: (n, 0, 0)),
            scratch_shapes=[
                pltpu.VMEM((C, 2 * DHW), jnp.float32),      # duplicated activation
                pltpu.VMEM((27 * C, DHW), jnp.bfloat16),    # im2col buffer
            ],
        ),
        compiler_params=pltpu.CompilerParams(
            dimension_semantics=("parallel",),
            vmem_limit_bytes=32 * 1024 * 1024,
        ),
    )(x2, scale, shift, w_mat, masks)

    # TODO(synk): drop_rate > 0 (F.dropout in training mode) is not applied;
    # PyTorch's dropout RNG stream cannot be reproduced. drop_rate=0 here.
    del drop_rate

    return out_flat.reshape(N, C + G, D, H, W)   # free reshape back to NCDHW


def _reference_forward(x_ncdhw, gamma, beta, conv_w, dilation_rate=1, eps=1e-5):
    """Pure-JAX reference (lax.conv_general_dilated) for verification."""
    x = x_ncdhw.astype(jnp.float32)
    mean = jnp.mean(x, axis=(0, 2, 3, 4), keepdims=True)
    var = jnp.mean((x - mean) ** 2, axis=(0, 2, 3, 4), keepdims=True)
    xn = (x - mean) / jnp.sqrt(var + eps)
    xn = xn * gamma.reshape(1, -1, 1, 1, 1) + beta.reshape(1, -1, 1, 1, 1)
    act = jnp.maximum(xn, 0.0)
    r = dilation_rate
    out = lax.conv_general_dilated(
        act, conv_w.astype(jnp.float32),
        window_strides=(1, 1, 1),
        padding=[(r, r)] * 3,
        rhs_dilation=(r, r, r),
        dimension_numbers=("NCDHW", "OIDHW", "NCDHW"))
    return jnp.concatenate([x, out], axis=1)


if __name__ == "__main__":
    # small shapes: batch=2, num_input_features=4, growth_rate=4, spatial=8^3
    N, C, G = 2, 4, 4
    D = H = W = 8
    dilation_rate = 1
    drop_rate = 0.0

    key = jax.random.PRNGKey(0)
    kx, kw, kg, kb = jax.random.split(key, 4)
    x = jax.random.normal(kx, (N, C, D, H, W), jnp.float32)
    fan_in = C * 27
    conv_w = jax.random.normal(kw, (G, C, 3, 3, 3), jnp.float32) / np.sqrt(fan_in)
    gamma = 1.0 + 0.1 * jax.random.normal(kg, (C,), jnp.float32)
    beta = 0.1 * jax.random.normal(kb, (C,), jnp.float32)

    fwd = jax.jit(functools.partial(single_layer_forward,
                                    drop_rate=drop_rate,
                                    dilation_rate=dilation_rate))
    out = jax.block_until_ready(fwd(x, gamma, beta, conv_w))

    ref = jax.block_until_ready(
        _reference_forward(x, gamma, beta, conv_w, dilation_rate=dilation_rate))

    assert out.shape == (N, C + G, D, H, W), out.shape
    # bf16 MXU operands in the kernel vs f32 reference conv -> loosened tolerance.
    np.testing.assert_allclose(np.asarray(out), np.asarray(ref),
                               rtol=3e-2, atol=3e-2)
    print("KERNEL_OK")
</pallas_src>

<mosaic_0001>
module attributes {stable_mosaic.version = 11 : i64} {
  func.func @_single_layer_kernel(%arg0: i32, %arg1: memref<1x4x512xf32, #tpu.memory_space<vmem>>, %arg2: memref<4x1xf32, #tpu.memory_space<vmem>>, %arg3: memref<4x1xf32, #tpu.memory_space<vmem>>, %arg4: memref<4x108xbf16, #tpu.memory_space<vmem>>, %arg5: memref<27x512xf32, #tpu.memory_space<vmem>>, %arg6: memref<1x8x512xf32, #tpu.memory_space<vmem>>, %arg7: memref<4x1024xf32, #tpu.memory_space<vmem>>, %arg8: memref<108x512xbf16, #tpu.memory_space<vmem>>) attributes {dimension_semantics = [#tpu.dimension_semantics<parallel>], iteration_bounds = array<i64: 2>, scalar_prefetch = 0 : i64, scratch_operands = 2 : i64, tpu.core_type = #tpu.core_type<tc>, window_params = [{transform_indices = @transform_0, window_bounds = array<i64: 1, 4, 512>}, {pipeline_mode = #tpu.pipeline_mode<synchronous>, transform_indices = @transform_1, window_bounds = array<i64: 4, 1>}, {pipeline_mode = #tpu.pipeline_mode<synchronous>, transform_indices = @transform_2, window_bounds = array<i64: 4, 1>}, {pipeline_mode = #tpu.pipeline_mode<synchronous>, transform_indices = @transform_3, window_bounds = array<i64: 4, 108>}, {pipeline_mode = #tpu.pipeline_mode<synchronous>, transform_indices = @transform_4, window_bounds = array<i64: 27, 512>}, {transform_indices = @transform_5, window_bounds = array<i64: 1, 8, 512>}]} {
    %c0 = arith.constant 0 : index
    %c0_0 = arith.constant 0 : index
    %c0_1 = arith.constant 0 : index
    %0 = vector.load %arg1[%c0, %c0_0, %c0_1] : memref<1x4x512xf32, #tpu.memory_space<vmem>>, vector<1x4x512xf32>
    %1 = vector.shape_cast %0 : vector<1x4x512xf32> to vector<4x512xf32>
    %c0_2 = arith.constant 0 : index
    %c0_3 = arith.constant 0 : index
    %2 = vector.load %arg2[%c0_2, %c0_3] : memref<4x1xf32, #tpu.memory_space<vmem>>, vector<4x1xf32>
    %3 = vector.broadcast %2 : vector<4x1xf32> to vector<4x512xf32>
    %4 = arith.mulf %1, %3 : vector<4x512xf32>
    %c0_4 = arith.constant 0 : index
    %c0_5 = arith.constant 0 : index
    %5 = vector.load %arg3[%c0_4, %c0_5] : memref<4x1xf32, #tpu.memory_space<vmem>>, vector<4x1xf32>
    %6 = vector.broadcast %5 : vector<4x1xf32> to vector<4x512xf32>
    %7 = arith.addf %4, %6 : vector<4x512xf32>
    %cst = arith.constant 0.000000e+00 : f32
    %8 = vector.broadcast %cst : f32 to vector<4x512xf32>
    %9 = arith.maximumf %7, %8 : vector<4x512xf32>
    %c0_6 = arith.constant 0 : index
    %c0_7 = arith.constant 0 : index
    %10 = vector.load %arg7[%c0_6, %c0_7] : memref<4x1024xf32, #tpu.memory_space<vmem>>, vector<4x512xf32>
    tpu.vector_store %arg7[%c0_6, %c0_7], %9 {strides = array<i32>} : memref<4x1024xf32, #tpu.memory_space<vmem>>, vector<4x512xf32>,
    %c0_8 = arith.constant 0 : index
    %c512 = arith.constant 512 : index
    %11 = vector.load %arg7[%c0_8, %c512] : memref<4x1024xf32, #tpu.memory_space<vmem>>, vector<4x512xf32>
    tpu.vector_store %arg7[%c0_8, %c512], %9 {strides = array<i32>} : memref<4x1024xf32, #tpu.memory_space<vmem>>, vector<4x512xf32>,
    %c0_9 = arith.constant 0 : index
    %c439 = arith.constant 439 : index
    %12 = vector.load %arg7[%c0_9, %c439] : memref<4x1024xf32, #tpu.memory_space<vmem>>, vector<4x512xf32>
    %c0_10 = arith.constant 0 : index
    %c0_11 = arith.constant 0 : index
    %13 = vector.load %arg5[%c0_10, %c0_11] : memref<27x512xf32, #tpu.memory_space<vmem>>, vector<1x512xf32>
    %14 = vector.broadcast %13 : vector<1x512xf32> to vector<4x512xf32>
    %15 = arith.mulf %12, %14 : vector<4x512xf32>
    %16 = arith.truncf %15 : vector<4x512xf32> to vector<4x512xbf16>
    %c0_12 = arith.constant 0 : index
    %c0_13 = arith.constant 0 : index
    %17 = vector.load %arg8[%c0_12, %c0_13] : memref<108x512xbf16, #tpu.memory_space<vmem>>, vector<4x512xbf16>
    tpu.vector_store %arg8[%c0_12, %c0_13], %16 {strides = array<i32>} : memref<108x512xbf16, #tpu.memory_space<vmem>>, vector<4x512xbf16>,
    %c0_14 = arith.constant 0 : index
    %c440 = arith.constant 440 : index
    %18 = vector.load %arg7[%c0_14, %c440] : memref<4x1024xf32, #tpu.memory_space<vmem>>, vector<4x512xf32>
    %c1 = arith.constant 1 : index
    %c0_15 = arith.constant 0 : index
    %19 = vector.load %arg5[%c1, %c0_15] : memref<27x512xf32, #tpu.memory_space<vmem>>, vector<1x512xf32>
    %20 = vector.broadcast %19 : vector<1x512xf32> to vector<4x512xf32>
    %21 = arith.mulf %18, %20 : vector<4x512xf32>
    %22 = arith.truncf %21 : vector<4x512xf32> to vector<4x512xbf16>
    %c4 = arith.constant 4 : index
    %c0_16 = arith.constant 0 : index
    %23 = vector.load %arg8[%c4, %c0_16] : memref<108x512xbf16, #tpu.memory_space<vmem>>, vector<4x512xbf16>
    tpu.vector_store %arg8[%c4, %c0_16], %22 {strides = array<i32>} : memref<108x512xbf16, #tpu.memory_space<vmem>>, vector<4x512xbf16>,
    %c0_17 = arith.constant 0 : index
    %c441 = arith.constant 441 : index
    %24 = vector.load %arg7[%c0_17, %c441] : memref<4x1024xf32, #tpu.memory_space<vmem>>, vector<4x512xf32>
    %c2 = arith.constant 2 : index
    %c0_18 = arith.constant 0 : index
    %25 = vector.load %arg5[%c2, %c0_18] : memref<27x512xf32, #tpu.memory_space<vmem>>, vector<1x512xf32>
    %26 = vector.broadcast %25 : vector<1x512xf32> to vector<4x512xf32>
    %27 = arith.mulf %24, %26 : vector<4x512xf32>
    %28 = arith.truncf %27 : vector<4x512xf32> to vector<4x512xbf16>
    %c8 = arith.constant 8 : index
    %c0_19 = arith.constant 0 : index
    %29 = vector.load %arg8[%c8, %c0_19] : memref<108x512xbf16, #tpu.memory_space<vmem>>, vector<4x512xbf16>
    tpu.vector_store %arg8[%c8, %c0_19], %28 {strides = array<i32>} : memref<108x512xbf16, #tpu.memory_space<vmem>>, vector<4x512xbf16>,
    %c0_20 = arith.constant 0 : index
    %c447 = arith.constant 447 : index
    %30 = vector.load %arg7[%c0_20, %c447] : memref<4x1024xf32, #tpu.memory_space<vmem>>, vector<4x512xf32>
    %c3 = arith.constant 3 : index
    %c0_21 = arith.constant 0 : index
    %31 = vector.load %arg5[%c3, %c0_21] : memref<27x512xf32, #tpu.memory_space<vmem>>, vector<1x512xf32>
    %32 = vector.broadcast %31 : vector<1x512xf32> to vector<4x512xf32>
    %33 = arith.mulf %30, %32 : vector<4x512xf32>
    %34 = arith.truncf %33 : vector<4x512xf32> to vector<4x512xbf16>
    %c12 = arith.constant 12 : index
    %c0_22 = arith.constant 0 : index
    %35 = vector.load %arg8[%c12, %c0_22] : memref<108x512xbf16, #tpu.memory_space<vmem>>, vector<4x512xbf16>
    tpu.vector_store %arg8[%c12, %c0_22], %34 {strides = array<i32>} : memref<108x512xbf16, #tpu.memory_space<vmem>>, vector<4x512xbf16>,
    %c0_23 = arith.constant 0 : index
    %c448 = arith.constant 448 : index
    %36 = vector.load %arg7[%c0_23, %c448] : memref<4x1024xf32, #tpu.memory_space<vmem>>, vector<4x512xf32>
    %c4_24 = arith.constant 4 : index
    %c0_25 = arith.constant 0 : index
    %37 = vector.load %arg5[%c4_24, %c0_25] : memref<27x512xf32, #tpu.memory_space<vmem>>, vector<1x512xf32>
    %38 = vector.broadcast %37 : vector<1x512xf32> to vector<4x512xf32>
    %39 = arith.mulf %36, %38 : vector<4x512xf32>
    %40 = arith.truncf %39 : vector<4x512xf32> to vector<4x512xbf16>
    %c16 = arith.constant 16 : index
    %c0_26 = arith.constant 0 : index
    %41 = vector.load %arg8[%c16, %c0_26] : memref<108x512xbf16, #tpu.memory_space<vmem>>, vector<4x512xbf16>
    tpu.vector_store %arg8[%c16, %c0_26], %40 {strides = array<i32>} : memref<108x512xbf16, #tpu.memory_space<vmem>>, vector<4x512xbf16>,
    %c0_27 = arith.constant 0 : index
    %c449 = arith.constant 449 : index
    %42 = vector.load %arg7[%c0_27, %c449] : memref<4x1024xf32, #tpu.memory_space<vmem>>, vector<4x512xf32>
    %c5 = arith.constant 5 : index
    %c0_28 = arith.constant 0 : index
    %43 = vector.load %arg5[%c5, %c0_28] : memref<27x512xf32, #tpu.memory_space<vmem>>, vector<1x512xf32>
    %44 = vector.broadcast %43 : vector<1x512xf32> to vector<4x512xf32>
    %45 = arith.mulf %42, %44 : vector<4x512xf32>
    %46 = arith.truncf %45 : vector<4x512xf32> to vector<4x512xbf16>
    %c20 = arith.constant 20 : index
    %c0_29 = arith.constant 0 : index
    %47 = vector.load %arg8[%c20, %c0_29] : memref<108x512xbf16, #tpu.memory_space<vmem>>, vector<4x512xbf16>
    tpu.vector_store %arg8[%c20, %c0_29], %46 {strides = array<i32>} : memref<108x512xbf16, #tpu.memory_space<vmem>>, vector<4x512xbf16>,
    %c0_30 = arith.constant 0 : index
    %c455 = arith.constant 455 : index
    %48 = vector.load %arg7[%c0_30, %c455] : memref<4x1024xf32, #tpu.memory_space<vmem>>, vector<4x512xf32>
    %c6 = arith.constant 6 : index
    %c0_31 = arith.constant 0 : index
    %49 = vector.load %arg5[%c6, %c0_31] : memref<27x512xf32, #tpu.memory_space<vmem>>, vector<1x512xf32>
    %50 = vector.broadcast %49 : vector<1x512xf32> to vector<4x512xf32>
    %51 = arith.mulf %48, %50 : vector<4x512xf32>
    %52 = arith.truncf %51 : vector<4x512xf32> to vector<4x512xbf16>
    %c24 = arith.constant 24 : index
    %c0_32 = arith.constant 0 : index
    %53 = vector.load %arg8[%c24, %c0_32] : memref<108x512xbf16, #tpu.memory_space<vmem>>, vector<4x512xbf16>
    tpu.vector_store %arg8[%c24, %c0_32], %52 {strides = array<i32>} : memref<108x512xbf16, #tpu.memory_space<vmem>>, vector<4x512xbf16>,
    %c0_33 = arith.constant 0 : index
    %c456 = arith.constant 456 : index
    %54 = vector.load %arg7[%c0_33, %c456] : memref<4x1024xf32, #tpu.memory_space<vmem>>, vector<4x512xf32>
    %c7 = arith.constant 7 : index
    %c0_34 = arith.constant 0 : index
    %55 = vector.load %arg5[%c7, %c0_34] : memref<27x512xf32, #tpu.memory_space<vmem>>, vector<1x512xf32>
    %56 = vector.broadcast %55 : vector<1x512xf32> to vector<4x512xf32>
    %57 = arith.mulf %54, %56 : vector<4x512xf32>
    %58 = arith.truncf %57 : vector<4x512xf32> to vector<4x512xbf16>
    %c28 = arith.constant 28 : index
    %c0_35 = arith.constant 0 : index
    %59 = vector.load %arg8[%c28, %c0_35] : memref<108x512xbf16, #tpu.memory_space<vmem>>, vector<4x512xbf16>
    tpu.vector_store %arg8[%c28, %c0_35], %58 {strides = array<i32>} : memref<108x512xbf16, #tpu.memory_space<vmem>>, vector<4x512xbf16>,
    %c0_36 = arith.constant 0 : index
    %c457 = arith.constant 457 : index
    %60 = vector.load %arg7[%c0_36, %c457] : memref<4x1024xf32, #tpu.memory_space<vmem>>, vector<4x512xf32>
    %c8_37 = arith.constant 8 : index
    %c0_38 = arith.constant 0 : index
    %61 = vector.load %arg5[%c8_37, %c0_38] : memref<27x512xf32, #tpu.memory_space<vmem>>, vector<1x512xf32>
    %62 = vector.broadcast %61 : vector<1x512xf32> to vector<4x512xf32>
    %63 = arith.mulf %60, %62 : vector<4x512xf32>
    %64 = arith.truncf %63 : vector<4x512xf32> to vector<4x512xbf16>
    %c32 = arith.constant 32 : index
    %c0_39 = arith.constant 0 : index
    %65 = vector.load %arg8[%c32, %c0_39] : memref<108x512xbf16, #tpu.memory_space<vmem>>, vector<4x512xbf16>
    tpu.vector_store %arg8[%c32, %c0_39], %64 {strides = array<i32>} : memref<108x512xbf16, #tpu.memory_space<vmem>>, vector<4x512xbf16>,
    %c0_40 = arith.constant 0 : index
    %c503 = arith.constant 503 : index
    %66 = vector.load %arg7[%c0_40, %c503] : memref<4x1024xf32, #tpu.memory_space<vmem>>, vector<4x512xf32>
    %c9 = arith.constant 9 : index
    %c0_41 = arith.constant 0 : index
    %67 = vector.load %arg5[%c9, %c0_41] : memref<27x512xf32, #tpu.memory_space<vmem>>, vector<1x512xf32>
    %68 = vector.broadcast %67 : vector<1x512xf32> to vector<4x512xf32>
    %69 = arith.mulf %66, %68 : vector<4x512xf32>
    %70 = arith.truncf %69 : vector<4x512xf32> to vector<4x512xbf16>
    %c36 = arith.constant 36 : index
    %c0_42 = arith.constant 0 : index
    %71 = vector.load %arg8[%c36, %c0_42] : memref<108x512xbf16, #tpu.memory_space<vmem>>, vector<4x512xbf16>
    tpu.vector_store %arg8[%c36, %c0_42], %70 {strides = array<i32>} : memref<108x512xbf16, #tpu.memory_space<vmem>>, vector<4x512xbf16>,
    %c0_43 = arith.constant 0 : index
    %c504 = arith.constant 504 : index
    %72 = vector.load %arg7[%c0_43, %c504] : memref<4x1024xf32, #tpu.memory_space<vmem>>, vector<4x512xf32>
    %c10 = arith.constant 10 : index
    %c0_44 = arith.constant 0 : index
    %73 = vector.load %arg5[%c10, %c0_44] : memref<27x512xf32, #tpu.memory_space<vmem>>, vector<1x512xf32>
    %74 = vector.broadcast %73 : vector<1x512xf32> to vector<4x512xf32>
    %75 = arith.mulf %72, %74 : vector<4x512xf32>
    %76 = arith.truncf %75 : vector<4x512xf32> to vector<4x512xbf16>
    %c40 = arith.constant 40 : index
    %c0_45 = arith.constant 0 : index
    %77 = vector.load %arg8[%c40, %c0_45] : memref<108x512xbf16, #tpu.memory_space<vmem>>, vector<4x512xbf16>
    tpu.vector_store %arg8[%c40, %c0_45], %76 {strides = array<i32>} : memref<108x512xbf16, #tpu.memory_space<vmem>>, vector<4x512xbf16>,
    %c0_46 = arith.constant 0 : index
    %c505 = arith.constant 505 : index
    %78 = vector.load %arg7[%c0_46, %c505] : memref<4x1024xf32, #tpu.memory_space<vmem>>, vector<4x512xf32>
    %c11 = arith.constant 11 : index
    %c0_47 = arith.constant 0 : index
    %79 = vector.load %arg5[%c11, %c0_47] : memref<27x512xf32, #tpu.memory_space<vmem>>, vector<1x512xf32>
    %80 = vector.broadcast %79 : vector<1x512xf32> to vector<4x512xf32>
    %81 = arith.mulf %78, %80 : vector<4x512xf32>
    %82 = arith.truncf %81 : vector<4x512xf32> to vector<4x512xbf16>
    %c44 = arith.constant 44 : index
    %c0_48 = arith.constant 0 : index
    %83 = vector.load %arg8[%c44, %c0_48] : memref<108x512xbf16, #tpu.memory_space<vmem>>, vector<4x512xbf16>
    tpu.vector_store %arg8[%c44, %c0_48], %82 {strides = array<i32>} : memref<108x512xbf16, #tpu.memory_space<vmem>>, vector<4x512xbf16>,
    %c0_49 = arith.constant 0 : index
    %c511 = arith.constant 511 : index
    %84 = vector.load %arg7[%c0_49, %c511] : memref<4x1024xf32, #tpu.memory_space<vmem>>, vector<4x512xf32>
    %c12_50 = arith.constant 12 : index
    %c0_51 = arith.constant 0 : index
    %85 = vector.load %arg5[%c12_50, %c0_51] : memref<27x512xf32, #tpu.memory_space<vmem>>, vector<1x512xf32>
    %86 = vector.broadcast %85 : vector<1x512xf32> to vector<4x512xf32>
    %87 = arith.mulf %84, %86 : vector<4x512xf32>
    %88 = arith.truncf %87 : vector<4x512xf32> to vector<4x512xbf16>
    %c48 = arith.constant 48 : index
    %c0_52 = arith.constant 0 : index
    %89 = vector.load %arg8[%c48, %c0_52] : memref<108x512xbf16, #tpu.memory_space<vmem>>, vector<4x512xbf16>
    tpu.vector_store %arg8[%c48, %c0_52], %88 {strides = array<i32>} : memref<108x512xbf16, #tpu.memory_space<vmem>>, vector<4x512xbf16>,
    %c0_53 = arith.constant 0 : index
    %c0_54 = arith.constant 0 : index
    %90 = vector.load %arg7[%c0_53, %c0_54] : memref<4x1024xf32, #tpu.memory_space<vmem>>, vector<4x512xf32>
    %c13 = arith.constant 13 : index
    %c0_55 = arith.constant 0 : index
    %91 = vector.load %arg5[%c13, %c0_55] : memref<27x512xf32, #tpu.memory_space<vmem>>, vector<1x512xf32>
    %92 = vector.broadcast %91 : vector<1x512xf32> to vector<4x512xf32>
    %93 = arith.mulf %90, %92 : vector<4x512xf32>
    %94 = arith.truncf %93 : vector<4x512xf32> to vector<4x512xbf16>
    %c52 = arith.constant 52 : index
    %c0_56 = arith.constant 0 : index
    %95 = vector.load %arg8[%c52, %c0_56] : memref<108x512xbf16, #tpu.memory_space<vmem>>, vector<4x512xbf16>
    tpu.vector_store %arg8[%c52, %c0_56], %94 {strides = array<i32>} : memref<108x512xbf16, #tpu.memory_space<vmem>>, vector<4x512xbf16>,
    %c0_57 = arith.constant 0 : index
    %c1_58 = arith.constant 1 : index
    %96 = vector.load %arg7[%c0_57, %c1_58] : memref<4x1024xf32, #tpu.memory_space<vmem>>, vector<4x512xf32>
    %c14 = arith.constant 14 : index
    %c0_59 = arith.constant 0 : index
    %97 = vector.load %arg5[%c14, %c0_59] : memref<27x512xf32, #tpu.memory_space<vmem>>, vector<1x512xf32>
    %98 = vector.broadcast %97 : vector<1x512xf32> to vector<4x512xf32>
    %99 = arith.mulf %96, %98 : vector<4x512xf32>
    %100 = arith.truncf %99 : vector<4x512xf32> to vector<4x512xbf16>
    %c56 = arith.constant 56 : index
    %c0_60 = arith.constant 0 : index
    %101 = vector.load %arg8[%c56, %c0_60] : memref<108x512xbf16, #tpu.memory_space<vmem>>, vector<4x512xbf16>
    tpu.vector_store %arg8[%c56, %c0_60], %100 {strides = array<i32>} : memref<108x512xbf16, #tpu.memory_space<vmem>>, vector<4x512xbf16>,
    %c0_61 = arith.constant 0 : index
    %c7_62 = arith.constant 7 : index
    %102 = vector.load %arg7[%c0_61, %c7_62] : memref<4x1024xf32, #tpu.memory_space<vmem>>, vector<4x512xf32>
    %c15 = arith.constant 15 : index
    %c0_63 = arith.constant 0 : index
    %103 = vector.load %arg5[%c15, %c0_63] : memref<27x512xf32, #tpu.memory_space<vmem>>, vector<1x512xf32>
    %104 = vector.broadcast %103 : vector<1x512xf32> to vector<4x512xf32>
    %105 = arith.mulf %102, %104 : vector<4x512xf32>
    %106 = arith.truncf %105 : vector<4x512xf32> to vector<4x512xbf16>
    %c60 = arith.constant 60 : index
    %c0_64 = arith.constant 0 : index
    %107 = vector.load %arg8[%c60, %c0_64] : memref<108x512xbf16, #tpu.memory_space<vmem>>, vector<4x512xbf16>
    tpu.vector_store %arg8[%c60, %c0_64], %106 {strides = array<i32>} : memref<108x512xbf16, #tpu.memory_space<vmem>>, vector<4x512xbf16>,
    %c0_65 = arith.constant 0 : index
    %c8_66 = arith.constant 8 : index
    %108 = vector.load %arg7[%c0_65, %c8_66] : memref<4x1024xf32, #tpu.memory_space<vmem>>, vector<4x512xf32>
    %c16_67 = arith.constant 16 : index
    %c0_68 = arith.constant 0 : index
    %109 = vector.load %arg5[%c16_67, %c0_68] : memref<27x512xf32, #tpu.memory_space<vmem>>, vector<1x512xf32>
    %110 = vector.broadcast %109 : vector<1x512xf32> to vector<4x512xf32>
    %111 = arith.mulf %108, %110 : vector<4x512xf32>
    %112 = arith.truncf %111 : vector<4x512xf32> to vector<4x512xbf16>
    %c64 = arith.constant 64 : index
    %c0_69 = arith.constant 0 : index
    %113 = vector.load %arg8[%c64, %c0_69] : memref<108x512xbf16, #tpu.memory_space<vmem>>, vector<4x512xbf16>
    tpu.vector_store %arg8[%c64, %c0_69], %112 {strides = array<i32>} : memref<108x512xbf16, #tpu.memory_space<vmem>>, vector<4x512xbf16>,
    %c0_70 = arith.constant 0 : index
    %c9_71 = arith.constant 9 : index
    %114 = vector.load %arg7[%c0_70, %c9_71] : memref<4x1024xf32, #tpu.memory_space<vmem>>, vector<4x512xf32>
    %c17 = arith.constant 17 : index
    %c0_72 = arith.constant 0 : index
    %115 = vector.load %arg5[%c17, %c0_72] : memref<27x512xf32, #tpu.memory_space<vmem>>, vector<1x512xf32>
    %116 = vector.broadcast %115 : vector<1x512xf32> to vector<4x512xf32>
    %117 = arith.mulf %114, %116 : vector<4x512xf32>
    %118 = arith.truncf %117 : vector<4x512xf32> to vector<4x512xbf16>
    %c68 = arith.constant 68 : index
    %c0_73 = arith.constant 0 : index
    %119 = vector.load %arg8[%c68, %c0_73] : memref<108x512xbf16, #tpu.memory_space<vmem>>, vector<4x512xbf16>
    tpu.vector_store %arg8[%c68, %c0_73], %118 {strides = array<i32>} : memref<108x512xbf16, #tpu.memory_space<vmem>>, vector<4x512xbf16>,
    %c0_74 = arith.constant 0 : index
    %c55 = arith.constant 55 : index
    %120 = vector.load %arg7[%c0_74, %c55] : memref<4x1024xf32, #tpu.memory_space<vmem>>, vector<4x512xf32>
    %c18 = arith.constant 18 : index
    %c0_75 = arith.constant 0 : index
    %121 = vector.load %arg5[%c18, %c0_75] : memref<27x512xf32, #tpu.memory_space<vmem>>, vector<1x512xf32>
    %122 = vector.broadcast %121 : vector<1x512xf32> to vector<4x512xf32>
    %123 = arith.mulf %120, %122 : vector<4x512xf32>
    %124 = arith.truncf %123 : vector<4x512xf32> to vector<4x512xbf16>
    %c72 = arith.constant 72 : index
    %c0_76 = arith.constant 0 : index
    %125 = vector.load %arg8[%c72, %c0_76] : memref<108x512xbf16, #tpu.memory_space<vmem>>, vector<4x512xbf16>
    tpu.vector_store %arg8[%c72, %c0_76], %124 {strides = array<i32>} : memref<108x512xbf16, #tpu.memory_space<vmem>>, vector<4x512xbf16>,
    %c0_77 = arith.constant 0 : index
    %c56_78 = arith.constant 56 : index
    %126 = vector.load %arg7[%c0_77, %c56_78] : memref<4x1024xf32, #tpu.memory_space<vmem>>, vector<4x512xf32>
    %c19 = arith.constant 19 : index
    %c0_79 = arith.constant 0 : index
    %127 = vector.load %arg5[%c19, %c0_79] : memref<27x512xf32, #tpu.memory_space<vmem>>, vector<1x512xf32>
    %128 = vector.broadcast %127 : vector<1x512xf32> to vector<4x512xf32>
    %129 = arith.mulf %126, %128 : vector<4x512xf32>
    %130 = arith.truncf %129 : vector<4x512xf32> to vector<4x512xbf16>
    %c76 = arith.constant 76 : index
    %c0_80 = arith.constant 0 : index
    %131 = vector.load %arg8[%c76, %c0_80] : memref<108x512xbf16, #tpu.memory_space<vmem>>, vector<4x512xbf16>
    tpu.vector_store %arg8[%c76, %c0_80], %130 {strides = array<i32>} : memref<108x512xbf16, #tpu.memory_space<vmem>>, vector<4x512xbf16>,
    %c0_81 = arith.constant 0 : index
    %c57 = arith.constant 57 : index
    %132 = vector.load %arg7[%c0_81, %c57] : memref<4x1024xf32, #tpu.memory_space<vmem>>, vector<4x512xf32>
    %c20_82 = arith.constant 20 : index
    %c0_83 = arith.constant 0 : index
    %133 = vector.load %arg5[%c20_82, %c0_83] : memref<27x512xf32, #tpu.memory_space<vmem>>, vector<1x512xf32>
    %134 = vector.broadcast %133 : vector<1x512xf32> to vector<4x512xf32>
    %135 = arith.mulf %132, %134 : vector<4x512xf32>
    %136 = arith.truncf %135 : vector<4x512xf32> to vector<4x512xbf16>
    %c80 = arith.constant 80 : index
    %c0_84 = arith.constant 0 : index
    %137 = vector.load %arg8[%c80, %c0_84] : memref<108x512xbf16, #tpu.memory_space<vmem>>, vector<4x512xbf16>
    tpu.vector_store %arg8[%c80, %c0_84], %136 {strides = array<i32>} : memref<108x512xbf16, #tpu.memory_space<vmem>>, vector<4x512xbf16>,
    %c0_85 = arith.constant 0 : index
    %c63 = arith.constant 63 : index
    %138 = vector.load %arg7[%c0_85, %c63] : memref<4x1024xf32, #tpu.memory_space<vmem>>, vector<4x512xf32>
    %c21 = arith.constant 21 : index
    %c0_86 = arith.constant 0 : index
    %139 = vector.load %arg5[%c21, %c0_86] : memref<27x512xf32, #tpu.memory_space<vmem>>, vector<1x512xf32>
    %140 = vector.broadcast %139 : vector<1x512xf32> to vector<4x512xf32>
    %141 = arith.mulf %138, %140 : vector<4x512xf32>
    %142 = arith.truncf %141 : vector<4x512xf32> to vector<4x512xbf16>
    %c84 = arith.constant 84 : index
    %c0_87 = arith.constant 0 : index
    %143 = vector.load %arg8[%c84, %c0_87] : memref<108x512xbf16, #tpu.memory_space<vmem>>, vector<4x512xbf16>
    tpu.vector_store %arg8[%c84, %c0_87], %142 {strides = array<i32>} : memref<108x512xbf16, #tpu.memory_space<vmem>>, vector<4x512xbf16>,
    %c0_88 = arith.constant 0 : index
    %c64_89 = arith.constant 64 : index
    %144 = vector.load %arg7[%c0_88, %c64_89] : memref<4x1024xf32, #tpu.memory_space<vmem>>, vector<4x512xf32>
    %c22 = arith.constant 22 : index
    %c0_90 = arith.constant 0 : index
    %145 = vector.load %arg5[%c22, %c0_90] : memref<27x512xf32, #tpu.memory_space<vmem>>, vector<1x512xf32>
    %146 = vector.broadcast %145 : vector<1x512xf32> to vector<4x512xf32>
    %147 = arith.mulf %144, %146 : vector<4x512xf32>
    %148 = arith.truncf %147 : vector<4x512xf32> to vector<4x512xbf16>
    %c88 = arith.constant 88 : index
    %c0_91 = arith.constant 0 : index
    %149 = vector.load %arg8[%c88, %c0_91] : memref<108x512xbf16, #tpu.memory_space<vmem>>, vector<4x512xbf16>
    tpu.vector_store %arg8[%c88, %c0_91], %148 {strides = array<i32>} : memref<108x512xbf16, #tpu.memory_space<vmem>>, vector<4x512xbf16>,
    %c0_92 = arith.constant 0 : index
    %c65 = arith.constant 65 : index
    %150 = vector.load %arg7[%c0_92, %c65] : memref<4x1024xf32, #tpu.memory_space<vmem>>, vector<4x512xf32>
    %c23 = arith.constant 23 : index
    %c0_93 = arith.constant 0 : index
    %151 = vector.load %arg5[%c23, %c0_93] : memref<27x512xf32, #tpu.memory_space<vmem>>, vector<1x512xf32>
    %152 = vector.broadcast %151 : vector<1x512xf32> to vector<4x512xf32>
    %153 = arith.mulf %150, %152 : vector<4x512xf32>
    %154 = arith.truncf %153 : vector<4x512xf32> to vector<4x512xbf16>
    %c92 = arith.constant 92 : index
    %c0_94 = arith.constant 0 : index
    %155 = vector.load %arg8[%c92, %c0_94] : memref<108x512xbf16, #tpu.memory_space<vmem>>, vector<4x512xbf16>
    tpu.vector_store %arg8[%c92, %c0_94], %154 {strides = array<i32>} : memref<108x512xbf16, #tpu.memory_space<vmem>>, vector<4x512xbf16>,
    %c0_95 = arith.constant 0 : index
    %c71 = arith.constant 71 : index
    %156 = vector.load %arg7[%c0_95, %c71] : memref<4x1024xf32, #tpu.memory_space<vmem>>, vector<4x512xf32>
    %c24_96 = arith.constant 24 : index
    %c0_97 = arith.constant 0 : index
    %157 = vector.load %arg5[%c24_96, %c0_97] : memref<27x512xf32, #tpu.memory_space<vmem>>, vector<1x512xf32>
    %158 = vector.broadcast %157 : vector<1x512xf32> to vector<4x512xf32>
    %159 = arith.mulf %156, %158 : vector<4x512xf32>
    %160 = arith.truncf %159 : vector<4x512xf32> to vector<4x512xbf16>
    %c96 = arith.constant 96 : index
    %c0_98 = arith.constant 0 : index
    %161 = vector.load %arg8[%c96, %c0_98] : memref<108x512xbf16, #tpu.memory_space<vmem>>, vector<4x512xbf16>
    tpu.vector_store %arg8[%c96, %c0_98], %160 {strides = array<i32>} : memref<108x512xbf16, #tpu.memory_space<vmem>>, vector<4x512xbf16>,
    %c0_99 = arith.constant 0 : index
    %c72_100 = arith.constant 72 : index
    %162 = vector.load %arg7[%c0_99, %c72_100] : memref<4x1024xf32, #tpu.memory_space<vmem>>, vector<4x512xf32>
    %c25 = arith.constant 25 : index
    %c0_101 = arith.constant 0 : index
    %163 = vector.load %arg5[%c25, %c0_101] : memref<27x512xf32, #tpu.memory_space<vmem>>, vector<1x512xf32>
    %164 = vector.broadcast %163 : vector<1x512xf32> to vector<4x512xf32>
    %165 = arith.mulf %162, %164 : vector<4x512xf32>
    %166 = arith.truncf %165 : vector<4x512xf32> to vector<4x512xbf16>
    %c100 = arith.constant 100 : index
    %c0_102 = arith.constant 0 : index
    %167 = vector.load %arg8[%c100, %c0_102] : memref<108x512xbf16, #tpu.memory_space<vmem>>, vector<4x512xbf16>
    tpu.vector_store %arg8[%c100, %c0_102], %166 {strides = array<i32>} : memref<108x512xbf16, #tpu.memory_space<vmem>>, vector<4x512xbf16>,
    %c0_103 = arith.constant 0 : index
    %c73 = arith.constant 73 : index
    %168 = vector.load %arg7[%c0_103, %c73] : memref<4x1024xf32, #tpu.memory_space<vmem>>, vector<4x512xf32>
    %c26 = arith.constant 26 : index
    %c0_104 = arith.constant 0 : index
    %169 = vector.load %arg5[%c26, %c0_104] : memref<27x512xf32, #tpu.memory_space<vmem>>, vector<1x512xf32>
    %170 = vector.broadcast %169 : vector<1x512xf32> to vector<4x512xf32>
    %171 = arith.mulf %168, %170 : vector<4x512xf32>
    %172 = arith.truncf %171 : vector<4x512xf32> to vector<4x512xbf16>
    %c104 = arith.constant 104 : index
    %c0_105 = arith.constant 0 : index
    %173 = vector.load %arg8[%c104, %c0_105] : memref<108x512xbf16, #tpu.memory_space<vmem>>, vector<4x512xbf16>
    tpu.vector_store %arg8[%c104, %c0_105], %172 {strides = array<i32>} : memref<108x512xbf16, #tpu.memory_space<vmem>>, vector<4x512xbf16>,
    %c0_106 = arith.constant 0 : index
    %c0_107 = arith.constant 0 : index
    %174 = vector.load %arg4[%c0_106, %c0_107] : memref<4x108xbf16, #tpu.memory_space<vmem>>, vector<4x108xbf16>
    %c0_108 = arith.constant 0 : index
    %c0_109 = arith.constant 0 : index
    %175 = vector.load %arg8[%c0_108, %c0_109] : memref<108x512xbf16, #tpu.memory_space<vmem>>, vector<108x512xbf16>
    %cst_110 = arith.constant dense<0.000000e+00> : vector<4x512xf32>
    %176 = tpu.matmul %174, %175, %cst_110 {dimension_numbers = #tpu.dot_dimension_numbers<[1], [0], [0], [1], [0, 0, 1, 1], [], []>} : vector<4x108xbf16>, vector<108x512xbf16>, vector<4x512xf32> -> vector<4x512xf32>
    %c0_111 = arith.constant 0 : index
    %c0_112 = arith.constant 0 : index
    %c0_113 = arith.constant 0 : index
    %177 = vector.load %arg6[%c0_111, %c0_112, %c0_113] : memref<1x8x512xf32, #tpu.memory_space<vmem>>, vector<1x4x512xf32>
    %178 = vector.shape_cast %177 : vector<1x4x512xf32> to vector<4x512xf32>
    %179 = vector.shape_cast %1 : vector<4x512xf32> to vector<1x4x512xf32>
    tpu.vector_store %arg6[%c0_111, %c0_112, %c0_113], %179 {strides = array<i32>} : memref<1x8x512xf32, #tpu.memory_space<vmem>>, vector<1x4x512xf32>,
    %c0_114 = arith.constant 0 : index
    %c4_115 = arith.constant 4 : index
    %c0_116 = arith.constant 0 : index
    %180 = vector.load %arg6[%c0_114, %c4_115, %c0_116] : memref<1x8x512xf32, #tpu.memory_space<vmem>>, vector<1x4x512xf32>
    %181 = vector.shape_cast %180 : vector<1x4x512xf32> to vector<4x512xf32>
    %182 = vector.shape_cast %176 : vector<4x512xf32> to vector<1x4x512xf32>
    tpu.vector_store %arg6[%c0_114, %c4_115, %c0_116], %182 {strides = array<i32>} : memref<1x8x512xf32, #tpu.memory_space<vmem>>, vector<1x4x512xf32>,
    return
  }
  func.func @transform_0(%arg0: i32) -> (i32, i32, i32) {
    %c0_i32 = arith.constant 0 : i32
    %c0_i32_0 = arith.constant 0 : i32
    %c0_i32_1 = arith.constant 0 : i32
    return %arg0, %c0_i32, %c0_i32_0 : i32, i32, i32
  }
  func.func @transform_1(%arg0: i32) -> (i32, i32) {
    %c0_i32 = arith.constant 0 : i32
    %c0_i32_0 = arith.constant 0 : i32
    %c0_i32_1 = arith.constant 0 : i32
    return %c0_i32, %c0_i32_0 : i32, i32
  }
  func.func @transform_2(%arg0: i32) -> (i32, i32) {
    %c0_i32 = arith.constant 0 : i32
    %c0_i32_0 = arith.constant 0 : i32
    %c0_i32_1 = arith.constant 0 : i32
    return %c0_i32, %c0_i32_0 : i32, i32
  }
  func.func @transform_3(%arg0: i32) -> (i32, i32) {
    %c0_i32 = arith.constant 0 : i32
    %c0_i32_0 = arith.constant 0 : i32
    %c0_i32_1 = arith.constant 0 : i32
    return %c0_i32, %c0_i32_0 : i32, i32
  }
  func.func @transform_4(%arg0: i32) -> (i32, i32) {
    %c0_i32 = arith.constant 0 : i32
    %c0_i32_0 = arith.constant 0 : i32
    %c0_i32_1 = arith.constant 0 : i32
    return %c0_i32, %c0_i32_0 : i32, i32
  }
  func.func @transform_5(%arg0: i32) -> (i32, i32, i32) {
    %c0_i32 = arith.constant 0 : i32
    %c0_i32_0 = arith.constant 0 : i32
    %c0_i32_1 = arith.constant 0 : i32
    return %arg0, %c0_i32, %c0_i32_0 : i32, i32, i32
  }
}

</mosaic_0001>

<bundles_post_ra>
// kernel: single_layer_forward.1
= control target key start
LH: loop header
LB: loop body
LE: loop exit
PB: predicated region body
PF: predicated region fallthrough
CT: control target
= control target key end

     0   :  { %s3175_s18 = smov 0   ;;  %s4112_s0 = inlined_call_operand.vmem [shape: f32[2,4,512], index: 0, kind: input, shape index: {}]   ;;  %s4113_s1 = inlined_call_operand.vmem [shape: f32[4,1], index: 1, kind: input, shape index: {}]   ;;  %s4114_s2 = inlined_call_operand.vmem [shape: f32[4,1], index: 2, kind: input, shape index: {}]   ;;  %s4115_s3 = inlined_call_operand.vmem [shape: bf16[4,108], index: 3, kind: input, shape index: {}]   ;;  %s4116_s4 = inlined_call_operand.vmem [shape: f32[27,512], index: 4, kind: input, shape index: {}]   ;;  %s4117_s5 = inlined_call_operand.vmem [shape: f32[2,8,512], index: 5, kind: output, shape index: {}]  }
   0x1 LB: > { %s2813_s19 = sadd.s32 4294967295, %s3124_s18   ;;  %p2817_p0 = scmp.ge.s32.totalorder %s3124_s18, 1  ;;  %s3124_s18 = sphi %s3175_s18, %s15_s18  }
   0x2   : > { %p187_p1 = scmp.lt.s32.totalorder %s3124_s18, 3 }
   0x4   : > { %p188_p2 = pnand %p2817_p0, %p187_p1 }
   0x5   : > { %v228_v0 = vld [vmem:[%s4113_s1] sm:$0xf] (!%p188_p2)  ;;  %v236_v1 = vlaneseq (!%p188_p2)  ;;  %v3126_v2 = vmov (!%p188_p2), 0   ;;  %s3127_s30 = smov (!%p188_p2), 56   ;;  %s3128_s8 = smov (!%p188_p2), 63   ;;  %vm295_vm0 = vcmask (!%p188_p2), 1043456  }
   0x6   : > { %191 = sbr.rel (%p188_p2) target bundleno = 659 (0x293), region = 40  ;;  %3071 = vset.pattern.permute.xlu0 (!%p188_p2), %v3126_v2  ;;  %2682 = vmatprep.mubr.bf16.mxu0 (!%p188_p2), %v3126_v2  ;;  %v243_v4 = vld [vmem:[%s4114_s2] sm:$0xf] (!%p188_p2)  ;;  %v2841_v32 = vld [vmem:[%s4116_s4 + $0x5] ss:$8 sm:$0xf] (!%p188_p2) }
   0x7   : > { %231 = vperm.xlu0 (!%p188_p2), %3071, %v228_v0   ;;  %v3186_v3 = vshrl.u32 (!%p188_p2), %v236_v1, 7  ;;  %2723 = vmatprep.mubr.bf16.mxu1 (!%p188_p2), %v3126_v2  ;;  %v2825_v5 = vld [vmem:[%s4116_s4 + $0x1] ss:$8 sm:$0xf] (!%p188_p2)  ;;  %s3129_s11 = smov (!%p188_p2), 55   ;;  %p215_p3 = scmp.lt.s32.totalorder (!%p188_p2), %s2813_s19, 1 }
   0x8   : > { %v2833_v14 = vld [vmem:[%s4116_s4 + $0x3] ss:$8 sm:$0xf] (!%p188_p2)  ;;  %v267_v20 = vld [vmem:[%s4116_s4] ss:$8 sm:$0xf] (!%p188_p2) }
   0x9   : > { %v3195_v6 = vsub.s32 (!%p188_p2), 0, %v3186_v3  ;;  %v3198_v7 = vsub.s32 (!%p188_p2), 1, %v3186_v3  ;;  %v3201_v8 = vsub.s32 (!%p188_p2), 2, %v3186_v3  ;;  %v3204_v9 = vsub.s32 (!%p188_p2), 3, %v3186_v3  ;;  %s3130_s16 = smov (!%p188_p2), 57   ;;  %s3132_s20 = smov (!%p188_p2), 72  }
   0xa   : > { %v2829_v25 = vld [vmem:[%s4116_s4 + $0x2] ss:$8 sm:$0xf] (!%p188_p2)  ;;  %v2849_v39 = vld [vmem:[%s4116_s4 + $0x7] ss:$8 sm:$0xf] (!%p188_p2) }
   0xb   : > { %246 = vperm.xlu0 (!%p188_p2), %3071, %v243_v4   ;;  %v356_v10 = vrot.slane (!%p188_p2), %v2825_v5, %v3195_v6  ;;  %v360_v11 = vrot.slane (!%p188_p2), %v2825_v5, %v3198_v7  ;;  %v364_v12 = vrot.slane (!%p188_p2), %v2825_v5, %v3201_v8  ;;  %v368_v13 = vrot.slane (!%p188_p2), %v2825_v5, %v3204_v9  ;;  %v2837_v40 = vld [vmem:[%s4116_s4 + $0x4] ss:$8 sm:$0xf] (!%p188_p2)  ;;  %v2845_v44 = vld [vmem:[%s4116_s4 + $0x6] ss:$8 sm:$0xf] (!%p188_p2) }
   0xc   : > { %v523_v16 = vrot.slane (!%p188_p2), %v2833_v14, %v3195_v6  ;;  %v527_v17 = vrot.slane (!%p188_p2), %v2833_v14, %v3198_v7  ;;  %v531_v18 = vrot.slane (!%p188_p2), %v2833_v14, %v3201_v8  ;;  %v535_v19 = vrot.slane (!%p188_p2), %v2833_v14, %v3204_v9  ;;  %v2857_v47 = vld [vmem:[%s4116_s4 + $0x21] ss:$8 sm:$0xf] (!%p188_p2)  ;;  %v2865_v52 = vld [vmem:[%s4116_s4 + $0x23] ss:$8 sm:$0xf] (!%p188_p2) }
   0xd   : > { %v369_v15 = vcombine.low %v356_v10, %v360_v11  ;;  %v370_v21 = vcombine.low %v364_v12, %v368_v13  ;;  %v272_v23 = vrot.slane %v267_v20, %v3195_v6  ;;  %v276_v24 = vrot.slane %v267_v20, %v3198_v7  ;;  %s4125_s19 = smov (!%p215_p3, %s2813_s19), 1  ;;  %v3296_v4 = vld [vmem:[%s4116_s4 + $0x43] ss:$8 sm:$0xf]  ;;  %s3133_s27 = smov 64  }
   0xe   : > { %v536_v22 = vcombine.low %v523_v16, %v527_v17  ;;  %v441_v27 = vrot.slane %v2829_v25, %v3195_v6  ;;  %v445_v28 = vrot.slane %v2829_v25, %v3198_v7  ;;  %v537_v29 = vcombine.low %v531_v18, %v535_v19  ;;  %s2962_s25 = sshll.u32 %s4125_s19, 4  ;;  %s2963_s26 = sshll.u32 %s4125_s19, 5  ;;  %v3308_v12 = vld [vmem:[%s4116_s4 + $0x20] ss:$8 sm:$0xf] }
   0xf   : > { %371 = vrot.lane.b32.xlu1 %v369_v15, %s3127_s30  ;;  %v285_v26 = vcombine.low %v272_v23, %v276_v24  ;;  %v280_v30 = vrot.slane %v267_v20, %v3201_v8  ;;  %v284_v31 = vrot.slane %v267_v20, %v3204_v9  ;;  %v690_v34 = vrot.slane %v2841_v32, %v3195_v6  ;;  %s219_s29 = scalar_lea.vmem %s4112_s0, %s2962_s25  ;;  %s3279_s9 = scalar_lea.vmem %s4117_s5, %s2963_s26  ;;  %v2884_v17 = vld [vmem:[%s4116_s4 + $0x40] ss:$8 sm:$0xf] }
  0x10   : > { %538 = vrot.lane.b32.xlu0 %v536_v22, %s3128_s8  ;;  %v454_v33 = vcombine.low %v441_v27, %v445_v28  ;;  %v694_v35 = vrot.slane %v2841_v32, %v3198_v7  ;;  %v449_v36 = vrot.slane %v2829_v25, %v3201_v8  ;;  %v453_v37 = vrot.slane %v2829_v25, %v3204_v9  ;;  %s3131_s19 = smov 65   ;;  %v3285_v61 = vld [vmem:[%s219_s29] sm:$0xff]  ;;  %v3287_v62 = vld [vmem:[%s219_s29 + $0x8] sm:$0xff]  ;;  %s3134_s13 = smov 71  }
  0x11   : > { %v286_v38 = vcombine.low %v280_v30, %v284_v31  ;;  %v857_v42 = vrot.slane %v2849_v39, %v3195_v6  ;;  %v861_v43 = vrot.slane %v2849_v39, %v3198_v7  ;;  %v698_v46 = vrot.slane %v2841_v32, %v3201_v8  ;;  %2738 = vst [vmem:[%s3279_s9] sm:$0xf] %v3285_v61  ;;  %v2892_v22 = vld [vmem:[%s4116_s4 + $0x42] ss:$8 sm:$0xf]  ;;  %s3135_s24 = smov 119   ;;  %s3136_s28 = smov 121  }
  0x12   : > { %v703_v41 = vcombine.low %v690_v34, %v694_v35  ;;  %v455_v45 = vcombine.low %v449_v36, %v453_v37  ;;  %v702_v48 = vrot.slane %v2841_v32, %v3204_v9  ;;  %v865_v49 = vrot.slane %v2849_v39, %v3201_v8  ;;  %2740 = vst [vmem:[%s3279_s9 + $0x10] sm:$0xf] %v3287_v62  ;;  %v2904_v31 = vld [vmem:[%s4116_s4 + $0x45] ss:$8 sm:$0xf]  ;;  %s3137_s7 = smov 73  }
  0x13   : > { %373 = vrot.lane.b32.xlu1 %v370_v21, %s3127_s30  ;;  %v869_v50 = vrot.slane %v2849_v39, %v3204_v9  ;;  %v616_v51 = vrot.slane %v2837_v40, %v3201_v8  ;;  %v620_v53 = vrot.slane %v2837_v40, %v3204_v9  ;;  %v783_v54 = vrot.slane %v2845_v44, %v3201_v8  ;;  %v2912_v36 = vld [vmem:[%s4116_s4 + $0x47] ss:$8 sm:$0xf]  ;;  %v3353_v37 = vld [vmem:[%s4116_s4 + $0x22] ss:$8 sm:$0xf] }
  0x14   : > { %287 = vrot.lane.b32.xlu0 %v285_v26, %s3129_s11  ;;  %v787_v55 = vrot.slane %v2845_v44, %v3204_v9  ;;  %v608_v56 = vrot.slane %v2837_v40, %v3195_v6  ;;  %v870_v57 = vcombine.low %v857_v42, %v861_v43  ;;  %v612_v58 = vrot.slane %v2837_v40, %v3198_v7  ;;  %s3138_s14 = smov 120   ;;  %s3139_s21 = smov 7  }
  0x15   : > { %v1032_v59 = vrot.slane %v2857_v47, %v3201_v8  ;;  %v1036_v60 = vrot.slane %v2857_v47, %v3204_v9  ;;  %v775_v63 = vrot.slane %v2845_v44, %v3195_v6  ;;  %v779_v0 = vrot.slane %v2845_v44, %v3198_v7  ;;  %s3140_s25 = smov 127   ;;  %s3141_s26 = smov 1  }
  0x16   : > { %v1199_v1 = vrot.slane %v2865_v52, %v3201_v8  ;;  %v1203_v2 = vrot.slane %v2865_v52, %v3204_v9  ;;  %v704_v5 = vcombine.low %v698_v46, %v702_v48  ;;  %v1024_v10 = vrot.slane %v2857_v47, %v3195_v6  ;;  %v2900_v46 = vld [vmem:[%s4116_s4 + $0x44] ss:$8 sm:$0xf]  ;;  %s3142_s29 = smov 9   ;;  %s3143_s6 = smov 8  }
  0x17   : > { %540 = vrot.lane.b32.xlu1 %v537_v29, %s3128_s8  ;;  %v1028_v11 = vrot.slane %v2857_v47, %v3198_v7  ;;  %v871_v13 = vcombine.low %v865_v49, %v869_v50  ;;  %v622_v14 = vcombine.low %v616_v51, %v620_v53  ;;  %v1191_v15 = vrot.slane %v2865_v52, %v3195_v6  ;;  %v2908_v51 = vld [vmem:[%s4116_s4 + $0x46] ss:$8 sm:$0xf] }
  0x18   : > { %456 = vrot.lane.b32.xlu0 %v454_v33, %s3130_s16  ;;  %v1195_v16 = vrot.slane %v2865_v52, %v3198_v7  ;;  %v3316_v18 = vcombine.low %v783_v54, %v787_v55  ;;  %v621_v19 = vcombine.low %v608_v56, %v612_v58  ;;  %v3318_v20 = vcombine.low %v1032_v59, %v1036_v60  ;;  %v2920_v60 = vld [vmem:[%s4116_s4 + $0x61] ss:$8 sm:$0xf] }
  0x19   : > { %v1833_v21 = vrot.slane %v3296_v4, %v3201_v8  ;;  %v788_v23 = vcombine.low %v775_v63, %v779_v0  ;;  %v3325_v24 = vcombine.low %v1199_v1, %v1203_v2  ;;  %v950_v25 = vrot.slane %v3308_v12, %v3201_v8 }
  0x1a   : > { %v1837_v26 = vrot.slane %v3296_v4, %v3204_v9  ;;  %v1037_v27 = vcombine.low %v1024_v10, %v1028_v11  ;;  %v942_v28 = vrot.slane %v3308_v12, %v3195_v6  ;;  %v1586_v29 = vrot.slane %v2884_v17, %v3201_v8 }
  0x1b   : > { %289 = vrot.lane.b32.xlu1 %v286_v38, %s3129_s11  ;;  %v1590_v30 = vrot.slane %v2884_v17, %v3204_v9  ;;  %v3339_v32 = vcombine.low %v1191_v15, %v1195_v16  ;;  %v946_v33 = vrot.slane %v3308_v12, %v3198_v7  ;;  %v1753_v35 = vrot.slane %v2892_v22, %v3201_v8 }
  0x1c   : > { %705 = vrot.lane.b32.xlu0 %v703_v41, %s3131_s19  ;;  %v3343_v34 = vcombine.low %v1833_v21, %v1837_v26  ;;  %v1757_v39 = vrot.slane %v2892_v22, %v3204_v9  ;;  %v1578_v40 = vrot.slane %v2884_v17, %v3195_v6  ;;  %v1582_v41 = vrot.slane %v2884_v17, %v3198_v7 }
  0x1d   : > { %v3355_v38 = vcombine.low %v1586_v29, %v1590_v30  ;;  %v1109_v42 = vrot.slane %v3353_v37, %v3195_v6  ;;  %v1996_v43 = vrot.slane %v2904_v31, %v3201_v8  ;;  %v2000_v44 = vrot.slane %v2904_v31, %v3204_v9 }
  0x1e   : > { %v3369_v47 = vcombine.low %v1753_v35, %v1757_v39  ;;  %v3371_v48 = vcombine.low %v1578_v40, %v1582_v41  ;;  %v1749_v49 = vrot.slane %v2892_v22, %v3198_v7  ;;  %v2159_v50 = vrot.slane %v2912_v36, %v3201_v8 }
  0x1f   : > { %458 = vrot.lane.b32.xlu1 %v455_v45, %s3130_s16  ;;  %v1745_v45 = vrot.slane %v2892_v22, %v3195_v6  ;;  %v3378_v52 = vcombine.low %v1996_v43, %v2000_v44  ;;  %v2163_v53 = vrot.slane %v2912_v36, %v3204_v9  ;;  %v1988_v54 = vrot.slane %v2904_v31, %v3195_v6 }
  0x20   : > { %872 = vrot.lane.b32.xlu0 %v870_v57, %s3132_s20  ;;  %v1992_v55 = vrot.slane %v2904_v31, %v3198_v7  ;;  %v1916_v57 = vrot.slane %v2900_v46, %v3201_v8  ;;  %v1920_v58 = vrot.slane %v2900_v46, %v3204_v9  ;;  %v2151_v59 = vrot.slane %v2912_v36, %v3195_v6 }
  0x21   : > { %v3384_v56 = vcombine.low %v1745_v45, %v1749_v49  ;;  %v3392_v63 = vcombine.low %v2159_v50, %v2163_v53  ;;  %v2155_v1 = vrot.slane %v2912_v36, %v3198_v7  ;;  %v2079_v2 = vrot.slane %v2908_v51, %v3201_v8 }
  0x22   : > { %v3394_v0 = vcombine.low %v1988_v54, %v1992_v55  ;;  %v3402_v10 = vcombine.low %v1916_v57, %v1920_v58  ;;  %v2083_v11 = vrot.slane %v2908_v51, %v3204_v9  ;;  %v1912_v15 = vrot.slane %v2900_v46, %v3198_v7 }
  0x23   : > { %707 = vrot.lane.b32.xlu1 %v704_v5, %s3131_s19  ;;  %v2916_v5 = vld [vmem:[%s4116_s4 + $0x60] ss:$8 sm:$0xf]  ;;  %v3407_v16 = vcombine.low %v2151_v59, %v2155_v1  ;;  %v2322_v17 = vrot.slane %v2920_v60, %v3201_v8  ;;  %v2071_v21 = vrot.slane %v2908_v51, %v3195_v6  ;;  %v2075_v26 = vrot.slane %v2908_v51, %v3198_v7 }
  0x24   : > { %623 = vrot.lane.b32.xlu0 %v621_v19, %s3133_s27  ;;  %v2326_v19 = vrot.slane %v2920_v60, %v3204_v9  ;;  %v3416_v22 = vcombine.low %v2079_v2, %v2083_v11  ;;  %v2242_v29 = vrot.slane %v2916_v5, %v3201_v8  ;;  %v2246_v31 = vrot.slane %v2916_v5, %v3204_v9 }
  0x25   : > { %v2314_v35 = vrot.slane %v2920_v60, %v3195_v6  ;;  %v2318_v36 = vrot.slane %v2920_v60, %v3198_v7  ;;  %v2234_v41 = vrot.slane %v2916_v5, %v3195_v6  ;;  %v2238_v45 = vrot.slane %v2916_v5, %v3198_v7  ;;  %v2880_v60 = vld [vmem:[%s4116_s4 + $0x27] ss:$8 sm:$0xf] }
  0x26   : > { %v3422_v30 = vcombine.low %v2322_v17, %v2326_v19  ;;  %v3434_v43 = vcombine.low %v2242_v29, %v2246_v31  ;;  %v955_v49 = vcombine.low %v942_v28, %v946_v33  ;;  %v1113_v50 = vrot.slane %v3353_v37, %v3198_v7  ;;  %v2869_v19 = vld [vmem:[%s4116_s4 + $0x24] ss:$8 sm:$0xf] }
  0x27   : > { %874 = vrot.lane.b32.xlu1 %v871_v13, %s3132_s20  ;;  %v1908_v13 = vrot.slane %v2900_v46, %v3195_v6  ;;  %v3436_v44 = vcombine.low %v2314_v35, %v2318_v36  ;;  %v954_v54 = vrot.slane %v3308_v12, %v3204_v9  ;;  %v3458_v55 = vcombine.low %v2234_v41, %v2238_v45  ;;  %v2888_v41 = vld [vmem:[%s4116_s4 + $0x41] ss:$8 sm:$0xf] }
  0x28   : > { %790 = vrot.lane.b32.xlu0 %v788_v23, %s3134_s13  ;;  %v2735_v57 = vcombine.high %v3287_v62, %v3287_v62  ;;  %v1493_v2 = vrot.slane %v2880_v60, %v3195_v6  ;;  %v1497_v5 = vrot.slane %v2880_v60, %v3198_v7  ;;  %v1117_v17 = vrot.slane %v3353_v37, %v3201_v8 }
  0x29   : > { %v3418_v23 = vcombine.low %v1908_v13, %v1912_v15  ;;  %v956_v15 = vcombine.low %v950_v25, %v954_v54  ;;  %v1501_v25 = vrot.slane %v2880_v60, %v3201_v8  ;;  %vm293_vm1 = vcmask 449536  }
  0x2a   : > { %2741 = vst [vmem:[%s3279_s9 + $0x18] sm:$0xf] %v2735_v57  ;;  %v1829_v57 = vrot.slane %v3296_v4, %v3198_v7  ;;  %vm462_vm2 = vcmask 465920   ;;  %vm629_vm3 = vcmask 523264   ;;  %vm506_vm4 = vcmask 580608  }
  0x2b   : > { %625 = vrot.lane.b32.xlu1 %v622_v14, %s3133_s27  ;;  %v2924_v14 = vld [vmem:[%s4116_s4 + $0x62] ss:$8 sm:$0xf]  ;;  %vm377_vm5 = vcmask 457728   ;;  %vm544_vm6 = vcmask 515072   ;;  %vm591_vm7 = vcmask 531456  }
  0x2c   : > { %1039 = vrot.lane.b32.xlu0 %v1037_v27, %s3135_s24  ;;  %v3429_v27 = vcombine.low %v2071_v21, %v2075_v26  ;;  %v2405_v39 = vrot.slane %v2924_v14, %v3201_v8  ;;  %v2409_v40 = vrot.slane %v2924_v14, %v3204_v9  ;;  %v2397_v46 = vrot.slane %v2924_v14, %v3195_v6 }
  0x2d   : > { %v2401_v53 = vrot.slane %v2924_v14, %v3198_v7  ;;  %v1506_v21 = vcombine.low %v1493_v2, %v1497_v5  ;;  %v1280_v14 = vrot.slane %v2869_v19, %v3198_v7  ;;  %v1505_v26 = vrot.slane %v2880_v60, %v3204_v9 }
  0x2e   : > { %v3453_v51 = vcombine.low %v2405_v39, %v2409_v40  ;;  %v1284_v39 = vrot.slane %v2869_v19, %v3201_v8  ;;  %v1288_v40 = vrot.slane %v2869_v19, %v3204_v9  ;;  %vm424_vm8 = vcmask 588800  }
  0x2f   : > { %792 = vrot.lane.b32.xlu1 %v3316_v18, %s3134_s13  ;;  %v2873_v18 = vld [vmem:[%s4116_s4 + $0x25] ss:$8 sm:$0xf]  ;;  %v3466_v28 = vcombine.low %v2397_v46, %v2401_v53  ;;  %v1507_v36 = vcombine.low %v1501_v25, %v1505_v26  ;;  %v1660_v46 = vrot.slane %v2888_v41, %v3195_v6  ;;  %vm339_vm9 = vcmask 596992  }
  0x30   : > { %1206 = vrot.lane.b32.xlu0 %v3339_v32, %s3136_s28  ;;  %v2734_v32 = vcombine.high %v3285_v61, %v3285_v61  ;;  %v1357_v33 = vrot.slane %v2873_v18, %v3195_v6  ;;  %v1361_v58 = vrot.slane %v2873_v18, %v3198_v7  ;;  %v1365_v59 = vrot.slane %v2873_v18, %v3201_v8 }
  0x31   : > { %v1369_v1 = vrot.slane %v2873_v18, %v3204_v9  ;;  %v1664_v18 = vrot.slane %v2888_v41, %v3198_v7  ;;  %vm4118_vm10 = vcmask 973824   ;;  %vm4119_vm11 = vcmask 982016  }
  0x32   : > { %2739 = vst [vmem:[%s3279_s9 + $0x8] sm:$0xf] %v2734_v32  ;;  %v3483_v11 = vcombine.low %v1357_v33, %v1361_v58  ;;  %v1825_v32 = vrot.slane %v3296_v4, %v3195_v6  ;;  %v1668_v58 = vrot.slane %v2888_v41, %v3201_v8  ;;  %vm1212_vm12 = vcmask 990208  }
  0x33   : > { %1041 = vrot.lane.b32.xlu1 %v3318_v20, %s3135_s24  ;;  %v1122_v20 = vcombine.low %v1109_v42, %v1113_v50  ;;  %v3485_v13 = vcombine.low %v1365_v59, %v1369_v1  ;;  %v1121_v42 = vrot.slane %v3353_v37, %v3204_v9  ;;  %v2876_v37 = vld [vmem:[%s4116_s4 + $0x26] ss:$8 sm:$0xf]  ;;  %v1673_v54 = vcombine.low %v1660_v46, %v1664_v18 }
  0x34   : > { %957 = vrot.lane.b32.xlu0 %v955_v49, %s3137_s7  ;;  %v1411_v31 = vrot.slane %v2876_v37, %v3195_v6  ;;  %v1415_v35 = vrot.slane %v2876_v37, %v3198_v7  ;;  %v1290_v49 = vcombine.low %v1284_v39, %v1288_v40  ;;  %v1419_v50 = vrot.slane %v2876_v37, %v3201_v8 }
  0x35   : > { %v1123_v12 = vcombine.low %v1117_v17, %v1121_v42  ;;  %v1423_v53 = vrot.slane %v2876_v37, %v3204_v9  ;;  %v1672_v59 = vrot.slane %v2888_v41, %v3204_v9  ;;  %v1838_v60 = vcombine.low %v1825_v32, %v1829_v57 }
  0x36   : > { %v1424_v45 = vcombine.low %v1411_v31, %v1415_v35  ;;  %vm1297_vm13 = vcmask 1039360   ;;  %vm1341_vm14 = vcmask 7168   ;;  %vm1259_vm15 = vcmask 56320  }
  0x37   : > { %1208 = vrot.lane.b32.xlu1 %v3325_v24, %s3136_s28  ;;  %v1276_v24 = vrot.slane %v2869_v19, %v3195_v6  ;;  %v1425_v33 = vcombine.low %v1419_v50, %v1423_v53  ;;  %v1674_v1 = vcombine.low %v1668_v58, %v1672_v59  ;;  %v3144_v6 = vmov 839922192  }
  0x38   : > { %1124 = vrot.lane.b32.xlu0 %v1122_v20, %s3138_s14  ;;  %v234_v7 = vunpack.c.l.s4 %v3144_v6 }
  0x39   : > { %v1289_v29 = vcombine.low %v1276_v24, %v1280_v14 }
  0x3a   : > { %v235_v8 = vunpack.c.0.s8 %v234_v7 }
  0x3b   : > { %959 = vrot.lane.b32.xlu1 %v956_v15, %s3137_s7 }
  0x3c   : > { %1508 = vrot.lane.b32.xlu0 %v1506_v21, %s3139_s21  ;;  %v238_v4 = vsub.s32 %v235_v8, %v3186_v3 }
  0x3f   : > { %1126 = vrot.lane.b32.xlu1 %v1123_v12, %s3138_s14 }
  0x40   : > { %1291 = vrot.lane.b32.xlu0 %v1289_v29, %s3140_s25 }
  0x43   : > { %1510 = vrot.lane.b32.xlu1 %v1507_v36, %s3139_s21 }
  0x44   : > { %1426 = vrot.lane.b32.xlu0 %v1424_v45, %s3141_s26 }
  0x47   : > { %1293 = vrot.lane.b32.xlu1 %v1290_v49, %s3140_s25 }
  0x48   : > { %1675 = vrot.lane.b32.xlu0 %v1673_v54, %s3142_s29 }
  0x4b   : > { %1428 = vrot.lane.b32.xlu1 %v1425_v33, %s3141_s26 }
  0x4c   : > { %1840 = vrot.lane.b32.xlu0 %v1838_v60, %s3127_s30 }
  0x4f   : > { %1677 = vrot.lane.b32.xlu1 %v1674_v1, %s3142_s29 }
  0x50   : > { %1593 = vrot.lane.b32.xlu0 %v3371_v48, %s3143_s6 }
  0x53   : > { %1842 = vrot.lane.b32.xlu1 %v3343_v34, %s3127_s30 }
  0x54   : > { %1760 = vrot.lane.b32.xlu0 %v3384_v56, %s3129_s11 }
  0x57   : > { %1595 = vrot.lane.b32.xlu1 %v3355_v38, %s3143_s6 }
  0x58   : > { %2003 = vrot.lane.b32.xlu0 %v3394_v0, %s3128_s8 }
  0x5b   : > { %1762 = vrot.lane.b32.xlu1 %v3369_v47, %s3129_s11 }
  0x5c   : > { %2166 = vrot.lane.b32.xlu0 %v3407_v16, %s3131_s19 }
  0x5f   : > { %2005 = vrot.lane.b32.xlu1 %v3378_v52, %s3128_s8 }
  0x60   : > { %1923 = vrot.lane.b32.xlu0 %v3418_v23, %s3130_s16 }
  0x63   : > { %2168 = vrot.lane.b32.xlu1 %v3392_v63, %s3131_s19 }
  0x64   : > { %2086 = vrot.lane.b32.xlu0 %v3429_v27, %s3133_s27 }
  0x67   : > { %1925 = vrot.lane.b32.xlu1 %v3402_v10, %s3130_s16 }
  0x68   : > { %2329 = vrot.lane.b32.xlu0 %v3436_v44, %s3132_s20 }
  0x6b   : > { %2088 = vrot.lane.b32.xlu1 %v3416_v22, %s3133_s27 }
  0x6c   : > { %2249 = vrot.lane.b32.xlu0 %v3458_v55, %s3134_s13 }
  0x6f   : > { %2331 = vrot.lane.b32.xlu1 %v3422_v30, %s3132_s20 }
  0x70   : > { %2412 = vrot.lane.b32.xlu0 %v3466_v28, %s3137_s7 }
  0x73   : > { %2251 = vrot.lane.b32.xlu1 %v3434_v43, %s3134_s13 }
  0x77   : > { %2414 = vrot.lane.b32.xlu1 %v3453_v51, %s3137_s7 }
  0x81   : > { %v3573_v9 = vpop.permute.xlu1 %371 }
  0x85   : > { %v3576_v34 = vpop.permute.xlu1 %373 }
  0x86   : > { %v232_v38 = vpop.permute.xlu0 %231  ;;  %v376_v14 = vrot.slane %v3576_v34, 4 }
  0x87   : > { %v239_v47 = vrot.slane %v232_v38, %v238_v4 }
  0x89   : > { %v3578_v48 = vpop.permute.xlu1 %540  ;;  %v241_v56 = vmul.f32 %v239_v47, %v3285_v61  ;;  %v242_v63 = vmul.f32 %v239_v47, %v3287_v62 }
  0x8a   : > { %v247_v52 = vpop.permute.xlu0 %246  ;;  %v543_v33 = vrot.slane %v3578_v48, 4 }
  0x8b   : > { %v254_v0 = vrot.slane %v247_v52, %v238_v4 }
  0x8d   : > { %v256_v10 = vadd.f32 %v254_v0, %v241_v56  ;;  %v257_v16 = vadd.f32 %v254_v0, %v242_v63  ;;  %v290_v22 = vpop.permute.xlu1 %289 }
  0x8e   : > { %v3582_v23 = vpop.permute.xlu0 %538  ;;  %v292_v28 = vrot.slane %v290_v22, 4 }
  0x8f   : > { %v3584_v30 = vmax.f32 %v256_v10, 0.0  ;;  %v3586_v3 = vmax.f32 %v257_v16, 0.0 }
  0x91   : > { %260 = vst [vmem:[#allocation2] sm:$0xff] %v3584_v30  ;;  %261 = vst [vmem:[#allocation2 + $0x8] sm:$0xff] %v3586_v3  ;;  %v1374_v61 = vmul.f32 %v3483_v11, %v3584_v30  ;;  %v1375_v62 = vmul.f32 %v3485_v13, %v3586_v3  ;;  %v459_v27 = vpop.permute.xlu1 %458 }
  0x92   : > { %262 = vst [vmem:[#allocation2 + $0x10] sm:$0xff] %v3584_v30  ;;  %263 = vst [vmem:[#allocation2 + $0x18] sm:$0xff] %v3586_v3  ;;  %v288_v43 = vpop.permute.xlu0 %287  ;;  %v461_v42 = vrot.slane %v459_v27, 4 }
  0x93   : > { %v291_v44 = vrot.slane %v288_v43, 4  ;;  %v1378_v51 = vcombine.high %v1374_v61, %v1374_v61  ;;  %v1379_v55 = vcombine.high %v1375_v62, %v1375_v62 }
  0x95   : > { %v3596_v20 = vpop.permute.xlu1 %707  ;;  %v3003_v2 = vpack.c.bf16 %v1378_v51, %v1374_v61  ;;  %v3004_v5 = vpack.c.bf16 %v1379_v55, %v1375_v62  ;;  %v296_v15 = vsel %vm295_vm0, %v291_v44, %v292_v28  ;;  %v294_v56 = vsel %vm293_vm1, %v291_v44, %v288_v43 }
  0x96   : > { %v457_v17 = vpop.permute.xlu0 %456  ;;  %v297_v26 = vsel %vm293_vm1, %v296_v15, %v290_v22  ;;  %v710_v22 = vrot.slane %v3596_v20, 4  ;;  %v375_v15 = vrot.slane %v3573_v9, 4 }
  0x97   : > { %v460_v11 = vrot.slane %v457_v17, 4  ;;  %v1396_v19 = vrot.slane %v3003_v2, 6  ;;  %v1397_v21 = vrot.slane %v3004_v5, 6 }
  0x99   : > { %v266_v13 = vld [vmem:[#allocation2 + $0x1c] sm:$0xf]  ;;  %v3599_v24 = vld [vmem:[#allocation2 + $0x14] sm:$0xff]  ;;  %v464_v12 = vsel %vm295_vm0, %v460_v11, %v461_v42  ;;  %v3603_v25 = vpop.permute.xlu1 %874  ;;  %1400 = vst [vmem:[#allocation3 + $0x60] sm:$0xcc] %v1396_v19  ;;  %v3618_v1 = vld [vmem:[#allocation2 + $0xc] sm:$0xff]  ;;  %v463_v61 = vsel %vm462_vm2, %v460_v11, %v457_v17 }
  0x9a   : > { %v434_v37 = vld [vmem:[#allocation2 + $0x1c] sm:$0xf]  ;;  %1401 = vst [vmem:[#allocation3 + $0x68] sm:$0xcc] %v1397_v21  ;;  %v3606_v31 = vpop.permute.xlu0 %705  ;;  %v303_v35 = vmul.f32 %v292_v28, %v266_v13  ;;  %v302_v36 = vmul.f32 %v297_v26, %v3599_v24  ;;  %v465_v40 = vsel %vm462_vm2, %v464_v12, %v459_v27  ;;  %v301_v10 = vmul.f32 %v3618_v1, %v294_v56 }
  0x9b   : > { %v349_v29 = vld [vmem:[#allocation2 + $0x1c] sm:$0xf]  ;;  %v471_v46 = vmul.f32 %v461_v42, %v434_v37  ;;  %v470_v32 = vmul.f32 %v465_v40, %v3599_v24  ;;  %v469_v42 = vmul.f32 %v3618_v1, %v463_v61  ;;  %v379_v13 = vsel %vm295_vm0, %v375_v15, %v376_v14 }
  0x9c   : > { %v386_v39 = vmul.f32 %v376_v14, %v349_v29  ;;  %v2966_v41 = vpack.c.bf16 %v303_v35, %v303_v35  ;;  %v307_v45 = vcombine.high %v302_v36, %v302_v36  ;;  %v516_v57 = vld [vmem:[#allocation2 + $0x1c] sm:$0xf]  ;;  %v306_v17 = vcombine.high %v301_v10, %v301_v10 }
  0x9d   : > { %v626_v18 = vpop.permute.xlu1 %625  ;;  %v601_v58 = vld [vmem:[#allocation2 + $0x1c] sm:$0xf]  ;;  %v2972_v59 = vpack.c.bf16 %v471_v46, %v471_v46  ;;  %v553_v7 = vmul.f32 %v543_v33, %v516_v57  ;;  %v475_v52 = vcombine.high %v470_v32, %v470_v32  ;;  %v380_v14 = vsel %vm377_vm5, %v379_v13, %v3576_v34 }
  0x9e   : > { %v628_v49 = vrot.slane %v626_v18, 4  ;;  %332 = vrot.lane.b32.xlu0 %v2966_v41, %s3137_s7  ;;  %v3613_v50 = vpop.permute.xlu0 %872  ;;  %v2965_v53 = vpack.c.bf16 %v307_v45, %v302_v36  ;;  %v2969_v54 = vpack.c.bf16 %v386_v39, %v386_v39  ;;  %v768_v0 = vld [vmem:[#allocation2 + $0x1c] sm:$0xf]  ;;  %v542_v36 = vrot.slane %v3582_v23, 4 }
  0x9f   : > { %v2971_v51 = vpack.c.bf16 %v475_v52, %v470_v32  ;;  %v2975_v43 = vpack.c.bf16 %v553_v7, %v553_v7  ;;  %v683_v5 = vld [vmem:[#allocation2 + $0x1c] sm:$0xf]  ;;  %v2964_v40 = vpack.c.bf16 %v306_v17, %v301_v10  ;;  %v474_v41 = vcombine.high %v469_v42, %v469_v42 }
  0xa0   : > { %330 = vrot.lane.b32.xlu1 %v2965_v53, %s3137_s7  ;;  %v638_v60 = vmul.f32 %v628_v49, %v601_v58  ;;  %v413_v38 = vrot.slane %v2969_v54, 6  ;;  %v720_v29 = vmul.f32 %v710_v22, %v683_v5  ;;  %v709_v45 = vrot.slane %v3606_v31, 4 }
  0xa1   : > { %v793_v6 = vpop.permute.xlu1 %792  ;;  %v580_v26 = vrot.slane %v2975_v43, 6  ;;  %v385_v58 = vmul.f32 %v380_v14, %v3599_v24  ;;  %v546_v34 = vsel %vm295_vm0, %v542_v36, %v543_v33  ;;  %v378_v7 = vsel %vm377_vm5, %v375_v15, %v3573_v9 }
  0xa2   : > { %v795_v8 = vrot.slane %v793_v6, 4  ;;  %500 = vrot.lane.b32.xlu0 %v2972_v59, %s3134_s13  ;;  %v624_v4 = vpop.permute.xlu0 %623  ;;  %v2978_v47 = vpack.c.bf16 %v638_v60, %v638_v60  ;;  %v2981_v32 = vpack.c.bf16 %v720_v29, %v720_v29  ;;  %v2970_v60 = vpack.c.bf16 %v474_v41, %v469_v42 }
  0xa3   : > { %v627_v63 = vrot.slane %v624_v4, 4  ;;  %v547_v10 = vsel %vm544_vm6, %v546_v34, %v3578_v48  ;;  %v545_v9 = vsel %vm544_vm6, %v542_v36, %v3582_v23 }
  0xa4   : > { %418 = vrot.lane.b32.xlu1 %v413_v38, %s3132_s20  ;;  %v805_v16 = vmul.f32 %v795_v8, %v768_v0  ;;  %v850_v38 = vld [vmem:[#allocation2 + $0x1c] sm:$0xf]  ;;  %v747_v52 = vrot.slane %v2981_v32, 6  ;;  %v390_v0 = vcombine.high %v385_v58, %v385_v58 }
  0xa5   : > { %v631_v62 = vsel %vm295_vm0, %v627_v63, %v628_v49  ;;  %v3634_v19 = vpop.permute.xlu1 %1041  ;;  %v630_v11 = vsel %vm629_vm3, %v627_v63, %v624_v4  ;;  %v876_v4 = vrot.slane %v3613_v50, 4  ;;  %v384_v63 = vmul.f32 %v3618_v1, %v378_v7 }
  0xa6   : > { %667 = vrot.lane.b32.xlu0 %v2978_v47, %s3133_s27  ;;  %v791_v27 = vpop.permute.xlu0 %790  ;;  %v2984_v55 = vpack.c.bf16 %v805_v16, %v805_v16  ;;  %v632_v44 = vsel %vm629_vm3, %v631_v62, %v626_v18  ;;  %v636_v39 = vmul.f32 %v630_v11, %v3618_v1  ;;  %v877_v18 = vrot.slane %v3603_v25, 4 }
  0xa7   : > { %v794_v28 = vrot.slane %v791_v27, 4  ;;  %v637_v2 = vmul.f32 %v632_v44, %v3599_v24  ;;  %v552_v62 = vmul.f32 %v547_v10, %v3599_v24  ;;  %v389_v43 = vcombine.high %v384_v63, %v384_v63 }
  0xa8   : > { %498 = vrot.lane.b32.xlu1 %v2971_v51, %s3134_s13  ;;  %v887_v56 = vmul.f32 %v877_v18, %v850_v38  ;;  %v712_v44 = vsel %vm591_vm7, %v709_v45, %v3606_v31 }
  0xa9   : > { %v798_v21 = vsel %vm295_vm0, %v794_v28, %v795_v8  ;;  %v642_v37 = vcombine.high %v637_v2, %v637_v2  ;;  %v797_v46 = vsel %vm506_vm4, %v794_v28, %v791_v27  ;;  %v3654_v49 = vpop.permute.xlu1 %1208  ;;  %v713_v8 = vsel %vm295_vm0, %v709_v45, %v710_v22 }
  0xaa   : > { %834 = vrot.lane.b32.xlu0 %v2984_v55, %s3130_s16  ;;  %v3643_v12 = vpop.permute.xlu0 %1039  ;;  %v799_v35 = vsel %vm506_vm4, %v798_v21, %v793_v6  ;;  %v803_v59 = vmul.f32 %v797_v46, %v3618_v1  ;;  %v641_v6 = vcombine.high %v636_v39, %v636_v39  ;;  %v551_v27 = vmul.f32 %v545_v9, %v3618_v1 }
  0xab   : > { %v2977_v54 = vpack.c.bf16 %v642_v37, %v637_v2  ;;  %v804_v57 = vmul.f32 %v799_v35, %v3599_v24  ;;  %v714_v51 = vsel %vm591_vm7, %v713_v8, %v3596_v20  ;;  %v880_v55 = vsel %vm295_vm0, %v876_v4, %v877_v18 }
  0xac   : > { %585 = vrot.lane.b32.xlu1 %v580_v26, %s3131_s19  ;;  %v2976_v22 = vpack.c.bf16 %v641_v6, %v636_v39  ;;  %v808_v61 = vcombine.high %v803_v59, %v803_v59  ;;  %v2987_v23 = vpack.c.bf16 %v887_v56, %v887_v56  ;;  %v2968_v28 = vpack.c.bf16 %v390_v0, %v385_v58 }
  0xad   : > { %v809_v33 = vcombine.high %v804_v57, %v804_v57  ;;  %v3676_v16 = vpop.permute.xlu1 %959  ;;  %v557_v15 = vcombine.high %v552_v62, %v552_v62  ;;  %v719_v42 = vmul.f32 %v714_v51, %v3599_v24  ;;  %v556_v20 = vcombine.high %v551_v27, %v551_v27 }
  0xae   : > { %328 = vrot.lane.b32.xlu0 %v2964_v40, %s3137_s7  ;;  %v3657_v53 = vpop.permute.xlu0 %1206  ;;  %v2982_v5 = vpack.c.bf16 %v808_v61, %v803_v59  ;;  %v881_v17 = vsel %vm424_vm8, %v880_v55, %v3603_v25  ;;  %v718_v11 = vmul.f32 %v712_v44, %v3618_v1  ;;  %v879_v21 = vsel %vm424_vm8, %v876_v4, %v3613_v50 }
  0xaf   : > { %v2983_v48 = vpack.c.bf16 %v809_v33, %v804_v57  ;;  %v914_v31 = vrot.slane %v2987_v23, 6  ;;  %v2967_v26 = vpack.c.bf16 %v389_v43, %v384_v63  ;;  %v412_v37 = vrot.slane %v2968_v28, 6  ;;  %v935_v28 = vld [vmem:[#allocation2 + $0x1c] sm:$0xf] }
  0xb0   : > { %665 = vrot.lane.b32.xlu1 %v2977_v54, %s3133_s27  ;;  %v2974_v35 = vpack.c.bf16 %v557_v15, %v552_v62  ;;  %v724_v36 = vcombine.high %v719_v42, %v719_v42  ;;  %v886_v39 = vmul.f32 %v881_v17, %v3599_v24  ;;  %v885_v25 = vmul.f32 %v879_v21, %v3618_v1  ;;  %v1017_v21 = vld [vmem:[#allocation2 + $0x1c] sm:$0xf] }
  0xb1   : > { %v3696_v13 = vpop.permute.xlu1 %1126  ;;  %v2973_v40 = vpack.c.bf16 %v556_v20, %v551_v27  ;;  %v1043_v50 = vrot.slane %v3643_v12, 4  ;;  %v962_v41 = vrot.slane %v3676_v16, 4  ;;  %v411_v45 = vrot.slane %v2967_v26, 6 }
  0xb2   : > { %496 = vrot.lane.b32.xlu0 %v2970_v60, %s3134_s13  ;;  %v958_v47 = vpop.permute.xlu0 %957  ;;  %v723_v46 = vcombine.high %v718_v11, %v718_v11  ;;  %v1044_v18 = vrot.slane %v3634_v19, 4  ;;  %v579_v57 = vrot.slane %v2974_v35, 6  ;;  %v2980_v58 = vpack.c.bf16 %v724_v36, %v719_v42 }
  0xb3   : > { %v961_v29 = vrot.slane %v958_v47, 4  ;;  %v891_v34 = vcombine.high %v886_v39, %v886_v39  ;;  %v578_v6 = vrot.slane %v2973_v40, 6  ;;  %v890_v8 = vcombine.high %v885_v25, %v885_v25 }
  0xb4   : > { %752 = vrot.lane.b32.xlu1 %v747_v52, %s3128_s8  ;;  %v1047_v60 = vsel %vm295_vm0, %v1043_v50, %v1044_v18  ;;  %v2979_v7 = vpack.c.bf16 %v723_v46, %v718_v11  ;;  %v1046_v4 = vsel %vm4118_vm10, %v1043_v50, %v3643_v12  ;;  %v1129_v51 = vrot.slane %v3696_v13, 4 }
  0xb5   : > { %v965_v54 = vsel %vm295_vm0, %v961_v29, %v962_v41  ;;  %v3709_v32 = vpop.permute.xlu1 %1510  ;;  %v964_v59 = vsel %vm339_vm9, %v961_v29, %v958_v47  ;;  %v746_v47 = vrot.slane %v2980_v58, 6  ;;  %v2986_v56 = vpack.c.bf16 %v891_v34, %v886_v39 }
  0xb6   : > { %663 = vrot.lane.b32.xlu0 %v2976_v22, %s3133_s27  ;;  %v3687_v2 = vpop.permute.xlu0 %1124  ;;  %v966_v38 = vsel %vm339_vm9, %v965_v54, %v3676_v16  ;;  %v970_v52 = vmul.f32 %v964_v59, %v3618_v1  ;;  %v1048_v63 = vsel %vm4118_vm10, %v1047_v60, %v3634_v19  ;;  %v1052_v0 = vmul.f32 %v1046_v4, %v3618_v1 }
  0xb7   : > { %v745_v12 = vrot.slane %v2979_v7, 6  ;;  %v2985_v9 = vpack.c.bf16 %v890_v8, %v885_v25  ;;  %v971_v16 = vmul.f32 %v966_v38, %v3599_v24  ;;  %v1128_v22 = vrot.slane %v3687_v2, 4  ;;  %v1102_v7 = vld [vmem:[#allocation2 + $0x1c] sm:$0xf] }
  0xb8   : > { %832 = vrot.lane.b32.xlu1 %v2983_v48, %s3130_s16  ;;  %v913_v61 = vrot.slane %v2986_v56, 6  ;;  %v975_v62 = vcombine.high %v970_v52, %v970_v52  ;;  %v1053_v27 = vmul.f32 %v1048_v63, %v3599_v24  ;;  %v1210_v19 = vrot.slane %v3657_v53, 4  ;;  %v1184_v63 = vld [vmem:[#allocation2 + $0x1c] sm:$0xf] }
  0xb9   : > { %v3726_v10 = vpop.permute.xlu1 %1293  ;;  %v912_v48 = vrot.slane %v2985_v9, 6  ;;  %v976_v23 = vcombine.high %v971_v16, %v971_v16  ;;  %v1057_v43 = vcombine.high %v1052_v0, %v1052_v0  ;;  %v1211_v44 = vrot.slane %v3654_v49, 4 }
  0xba   : > { %830 = vrot.lane.b32.xlu0 %v2982_v5, %s3130_s16  ;;  %v3704_v14 = vpop.permute.xlu0 %1508  ;;  %v1132_v5 = vsel %vm295_vm0, %v1128_v22, %v1129_v51  ;;  %v2988_v42 = vpack.c.bf16 %v975_v62, %v970_v52  ;;  %v972_v20 = vmul.f32 %v962_v41, %v935_v28  ;;  %v1058_v17 = vcombine.high %v1053_v27, %v1053_v27 }
  0xbb   : > { %v1131_v11 = vsel %vm4119_vm11, %v1128_v22, %v3687_v2  ;;  %v2989_v26 = vpack.c.bf16 %v976_v23, %v971_v16  ;;  %v1054_v29 = vmul.f32 %v1044_v18, %v1017_v21  ;;  %v1213_v35 = vsel %vm1212_vm12, %v1210_v19, %v3657_v53 }
  0xbc   : > { %919 = vrot.lane.b32.xlu1 %v914_v31, %s3127_s30  ;;  %v1214_v31 = vsel %vm295_vm0, %v1210_v19, %v1211_v44  ;;  %v1133_v36 = vsel %vm4119_vm11, %v1132_v5, %v3696_v13  ;;  %v1137_v39 = vmul.f32 %v1131_v11, %v3618_v1  ;;  %v2990_v2 = vpack.c.bf16 %v972_v20, %v972_v20 }
  0xbd   : > { %v3740_v15 = vpop.permute.xlu1 %1428  ;;  %v2992_v40 = vpack.c.bf16 %v1058_v17, %v1053_v27  ;;  %v1215_v50 = vsel %vm1212_vm12, %v1214_v31, %v3654_v49  ;;  %v1219_v41 = vmul.f32 %v1213_v35, %v3618_v1  ;;  %v2993_v46 = vpack.c.bf16 %v1054_v29, %v1054_v29 }
  0xbe   : > { %416 = vrot.lane.b32.xlu0 %v412_v37, %s3132_s20  ;;  %v3720_v33 = vpop.permute.xlu0 %1291  ;;  %v2991_v37 = vpack.c.bf16 %v1057_v43, %v1052_v0  ;;  %v1138_v13 = vmul.f32 %v1133_v36, %v3599_v24  ;;  %v1220_v58 = vmul.f32 %v1215_v50, %v3599_v24  ;;  %v1296_v49 = vrot.slane %v3726_v10, 4 }
  0xbf   : > { %v1295_v18 = vrot.slane %v3720_v33, 4  ;;  %v1080_v54 = vrot.slane %v2992_v40, 6  ;;  %v1081_v59 = vrot.slane %v2993_v46, 6  ;;  %v1139_v52 = vmul.f32 %v1129_v51, %v1102_v7 }
  0xc0   : > { %414 = vrot.lane.b32.xlu1 %v411_v45, %s3132_s20  ;;  %v1079_v53 = vrot.slane %v2991_v37, 6  ;;  %v1143_v60 = vcombine.high %v1138_v13, %v1138_v13  ;;  %v1221_v16 = vmul.f32 %v1211_v44, %v1184_v63  ;;  %v1512_v22 = vrot.slane %v3704_v14, 4 }
  0xc1   : > { %v3758_v45 = vpop.permute.xlu1 %1677  ;;  %v1299_v8 = vsel %vm295_vm0, %v1295_v18, %v1296_v49  ;;  %v1298_v56 = vsel %vm1297_vm13, %v1295_v18, %v3720_v33  ;;  %v1431_v62 = vrot.slane %v3740_v15, 4  ;;  %v2996_v33 = vpack.c.bf16 %v1139_v52, %v1139_v52 }
  0xc2   : > { %583 = vrot.lane.b32.xlu0 %v579_v57, %s3131_s19  ;;  %v3735_v55 = vpop.permute.xlu0 %1426  ;;  %v1142_v57 = vcombine.high %v1137_v39, %v1137_v39  ;;  %v1304_v27 = vmul.f32 %v1298_v56, %v3618_v1  ;;  %v1515_v17 = vsel %vm1259_vm15, %v1512_v22, %v3704_v14  ;;  %vm1174_vm10 = vcmask 64512  }
  0xc3   : > { %v1430_v0 = vrot.slane %v3735_v55, 4  ;;  %v1521_v35 = vmul.f32 %v1515_v17, %v3584_v30  ;;  %vm1092_vm11 = vcmask 72704   ;;  %v1571_v17 = vld [vmem:[#allocation2 + $0x10] sm:$0xf] }
  0xc4   : > { %581 = vrot.lane.b32.xlu1 %v578_v6, %s3131_s19  ;;  %v1224_v6 = vcombine.high %v1219_v41, %v1219_v41  ;;  %v2994_v38 = vpack.c.bf16 %v1142_v57, %v1137_v39  ;;  %v1309_v20 = vcombine.high %v1304_v27, %v1304_v27  ;;  %v3808_v39 = vld [vmem:[#allocation2 + $0x8] sm:$0xff] }
  0xc5   : > { %v3770_v4 = vpop.permute.xlu1 %1842  ;;  %v1434_v23 = vsel %vm295_vm0, %v1430_v0, %v1431_v62  ;;  %v1433_v1 = vsel %vm1341_vm14, %v1430_v0, %v3735_v55  ;;  %v1526_v57 = vcombine.high %v1521_v35, %v1521_v35 }
  0xc6   : > { %750 = vrot.lane.b32.xlu0 %v746_v47, %s3128_s8  ;;  %v3752_v25 = vpop.permute.xlu0 %1675  ;;  %v1225_v47 = vcombine.high %v1220_v58, %v1220_v58  ;;  %v2997_v9 = vpack.c.bf16 %v1224_v6, %v1219_v41  ;;  %v1435_v11 = vsel %vm1341_vm14, %v1434_v23, %v3740_v15  ;;  %v1439_v21 = vmul.f32 %v1433_v1, %v3584_v30 }
  0xc7   : > { %v3000_v14 = vpack.c.bf16 %v1309_v20, %v1304_v27  ;;  %v1440_v15 = vmul.f32 %v1435_v11, %v3586_v3  ;;  %v3008_v63 = vpack.c.bf16 %v1526_v57, %v1521_v35  ;;  %v1845_v20 = vrot.slane %v3770_v4, 4  ;;  %v1653_v11 = vld [vmem:[#allocation2 + $0x10] sm:$0xf] }
  0xc8   : > { %748 = vrot.lane.b32.xlu1 %v745_v12, %s3128_s8  ;;  %v2995_v12 = vpack.c.bf16 %v1143_v60, %v1138_v13  ;;  %v2998_v51 = vpack.c.bf16 %v1225_v47, %v1220_v58  ;;  %v1246_v44 = vrot.slane %v2997_v9, 6  ;;  %v1444_v50 = vcombine.high %v1439_v21, %v1439_v21 }
  0xc9   : > { %v3785_v43 = vpop.permute.xlu1 %1595  ;;  %v1445_v18 = vcombine.high %v1440_v15, %v1440_v15 }
  0xca   : > { %917 = vrot.lane.b32.xlu0 %v913_v61, %s3127_s30  ;;  %v3766_v34 = vpop.permute.xlu0 %1840  ;;  %v1300_v61 = vsel %vm1297_vm13, %v1299_v8, %v3726_v10  ;;  %v2999_v10 = vpack.c.bf16 %v1221_v16, %v1221_v16  ;;  %v1598_v46 = vrot.slane %v3785_v43, 4  ;;  %v3005_v7 = vpack.c.bf16 %v1444_v50, %v1439_v21 }
  0xcb   : > { %v1305_v28 = vmul.f32 %v1300_v61, %v3599_v24  ;;  %v3006_v56 = vpack.c.bf16 %v1445_v18, %v1440_v15 }
  0xcc   : > { %915 = vrot.lane.b32.xlu1 %v912_v48, %s3127_s30  ;;  %v1513_v48 = vrot.slane %v3709_v32, 4  ;;  %v1248_v24 = vrot.slane %v2999_v10, 6  ;;  %v1608_v21 = vmul.f32 %v1598_v46, %v1571_v17 }
  0xcd   : > { %v1310_v55 = vcombine.high %v1305_v28, %v1305_v28  ;;  %v3804_v36 = vpop.permute.xlu1 %1762 }
  0xce   : > { %997 = vrot.lane.b32.xlu0 %v2988_v42, %s3129_s11  ;;  %v1594_v19 = vpop.permute.xlu0 %1593  ;;  %v1516_v5 = vsel %vm295_vm0, %v1512_v22, %v1513_v48  ;;  %v1247_v42 = vrot.slane %v2998_v51, 6  ;;  %v1765_v1 = vrot.slane %v3804_v36, 4 }
  0xcf   : > { %v1517_v29 = vsel %vm1259_vm15, %v1516_v5, %v3709_v32  ;;  %v3001_v40 = vpack.c.bf16 %v1310_v55, %v1305_v28 }
  0xd0   : > { %999 = vrot.lane.b32.xlu1 %v2989_v26, %s3129_s11  ;;  %v1269_v26 = vld [vmem:[#allocation2 + $0x1c] sm:$0xf]  ;;  %v1522_v41 = vmul.f32 %v1517_v29, %v3808_v39 }
  0xd1   : > { %v1306_v37 = vmul.f32 %v1296_v49, %v1269_v26  ;;  %v1486_v49 = vld [vmem:[#allocation2 + $0x10] sm:$0xf]  ;;  %v3819_v6 = vpop.permute.xlu1 %2005 }
  0xd2   : > { %1001 = vrot.lane.b32.xlu0 %v2990_v2, %s3129_s11  ;;  %v3798_v31 = vpop.permute.xlu0 %1760  ;;  %v1597_v2 = vrot.slane %v1594_v19, 4  ;;  %v1527_v8 = vcombine.high %v1522_v41, %v1522_v41 }
  0xd3   : > { %v3002_v32 = vpack.c.bf16 %v1306_v37, %v1306_v37  ;;  %v1764_v23 = vrot.slane %v3798_v31, 4 }
  0xd4   : > { %1082 = vrot.lane.b32.xlu1 %v1079_v53, %s3142_s29  ;;  %v1679_v53 = vrot.slane %v3752_v25, 4  ;;  %v1601_v60 = vsel %vm295_vm0, %v1597_v2, %v1598_v46  ;;  %v1600_v52 = vsel %vm1174_vm10, %v1597_v2, %v1594_v19  ;;  %v3009_v61 = vpack.c.bf16 %v1527_v8, %v1522_v41 }
  0xd5   : > { %v1606_v9 = vmul.f32 %v1600_v52, %v3584_v30  ;;  %v1767_v55 = vsel %vm295_vm0, %v1764_v23, %v1765_v1  ;;  %v1766_v35 = vsel %vm293_vm1, %v1764_v23, %v3798_v31  ;;  %v3013_v41 = vpack.c.bf16 %v1608_v21, %v1608_v21 }
  0xd6   : > { %1084 = vrot.lane.b32.xlu0 %v1080_v54, %s3142_s29  ;;  %v3814_v13 = vpop.permute.xlu0 %2003  ;;  %v1404_v54 = vld [vmem:[#allocation2 + $0x10] sm:$0xf]  ;;  %v1682_v0 = vsel %vm1092_vm11, %v1679_v53, %v3752_v25  ;;  %v1548_v25 = vrot.slane %v3008_v63, 6  ;;  %v1768_v50 = vsel %vm293_vm1, %v1767_v55, %v3804_v36 }
  0xd7   : > { %v1441_v58 = vmul.f32 %v1431_v62, %v1404_v54  ;;  %v1688_v19 = vmul.f32 %v1682_v0, %v3584_v30  ;;  %v2008_v0 = vrot.slane %v3819_v6, 4 }
  0xd8   : > { %1086 = vrot.lane.b32.xlu1 %v1081_v59, %s3142_s29  ;;  %v1680_v59 = vrot.slane %v3758_v45, 4 }
  0xd9   : > { %v3007_v22 = vpack.c.bf16 %v1441_v58, %v1441_v58  ;;  %v1693_v28 = vcombine.high %v1688_v19, %v1688_v19 }
  0xda   : > { %1164 = vrot.lane.b32.xlu0 %v2994_v38, %s3143_s6  ;;  %v1523_v38 = vmul.f32 %v1513_v48, %v1486_v49  ;;  %v1683_v47 = vsel %vm295_vm0, %v1679_v53, %v1680_v59  ;;  %v3830_v16 = vpop.permute.xlu0 %2166  ;;  %v1611_v48 = vcombine.high %v1606_v9, %v1606_v9  ;;  %v1690_v29 = vmul.f32 %v1680_v59, %v1653_v11 }
  0xdb   : > { %v1684_v27 = vsel %vm1092_vm11, %v1683_v47, %v3758_v45  ;;  %v1844_v45 = vrot.slane %v3766_v34, 4 }
  0xdc   : > { %1166 = vrot.lane.b32.xlu1 %v2995_v12, %s3143_s6  ;;  %v1602_v12 = vsel %vm1174_vm10, %v1601_v60, %v3785_v43  ;;  %v3010_v62 = vpack.c.bf16 %v1523_v38, %v1523_v38  ;;  %v1549_v43 = vrot.slane %v3009_v61, 6  ;;  %v3016_v46 = vpack.c.bf16 %v1690_v29, %v1690_v29  ;;  %v1738_v38 = vld [vmem:[#allocation2 + $0x10] sm:$0xf] }
  0xdd   : > { %v1607_v51 = vmul.f32 %v1602_v12, %v3808_v39  ;;  %v1847_v15 = vsel %vm295_vm0, %v1844_v45, %v1845_v20  ;;  %v1774_v63 = vmul.f32 %v1765_v1, %v1738_v38 }
  0xde   : > { %1168 = vrot.lane.b32.xlu0 %v2996_v33, %s3143_s6  ;;  %v3836_v33 = vpop.permute.xlu1 %2168  ;;  %v1550_v10 = vrot.slane %v3010_v62, 6  ;;  %v1924_v5 = vpop.permute.xlu0 %1923  ;;  %v1848_v18 = vsel %vm377_vm5, %v1847_v15, %v3770_v4  ;;  %v2007_v4 = vrot.slane %v3814_v13, 4  ;;  %v1818_v62 = vld [vmem:[#allocation2 + $0x10] sm:$0xf] }
  0xdf   : > { %v1853_v36 = vmul.f32 %v1848_v18, %v3586_v3  ;;  %v1927_v59 = vrot.slane %v1924_v5, 4  ;;  %v2171_v15 = vrot.slane %v3836_v33, 4 }
  0xe0   : > { %1249 = vrot.lane.b32.xlu1 %v1246_v44, %s3139_s21  ;;  %v1689_v44 = vmul.f32 %v1684_v27, %v3808_v39  ;;  %v2009_v23 = vsel %vm544_vm6, %v2007_v4, %v3814_v13 }
  0xe1   : > { %v1858_v61 = vcombine.high %v1853_v36, %v1853_v36  ;;  %v1929_v27 = vsel %vm462_vm2, %v1927_v59, %v1924_v5 }
  0xe2   : > { %1251 = vrot.lane.b32.xlu0 %v1247_v42, %s3139_s21  ;;  %v1612_v42 = vcombine.high %v1607_v51, %v1607_v51  ;;  %v3848_v26 = vpop.permute.xlu1 %1925  ;;  %v1694_v37 = vcombine.high %v1689_v44, %v1689_v44  ;;  %v3860_v53 = vpop.permute.xlu0 %2086 }
  0xe3   : > { %v1928_v52 = vrot.slane %v3848_v26, 4 }
  0xe4   : > { %1253 = vrot.lane.b32.xlu1 %v1248_v24, %s3139_s21  ;;  %v3011_v24 = vpack.c.bf16 %v1611_v48, %v1606_v9  ;;  %v3012_v2 = vpack.c.bf16 %v1612_v42, %v1607_v51  ;;  %v3015_v31 = vpack.c.bf16 %v1694_v37, %v1689_v44  ;;  %v2010_v51 = vsel %vm295_vm0, %v2007_v4, %v2008_v0 }
  0xe5   : > { %v1930_v9 = vsel %vm295_vm0, %v1927_v59, %v1928_v52  ;;  %v3019_v44 = vpack.c.bf16 %v1774_v63, %v1774_v63  ;;  %v2011_v1 = vsel %vm544_vm6, %v2010_v51, %v3819_v6  ;;  %v2170_v6 = vrot.slane %v3830_v16, 4 }
  0xe6   : > { %1331 = vrot.lane.b32.xlu0 %v3000_v14, %s3141_s26  ;;  %v3014_v14 = vpack.c.bf16 %v1693_v28, %v1688_v19  ;;  %v3866_v58 = vpop.permute.xlu1 %2088  ;;  %v1716_v60 = vrot.slane %v3015_v31, 6  ;;  %v3874_v47 = vpop.permute.xlu0 %2329  ;;  %v1854_v19 = vmul.f32 %v1845_v20, %v1818_v62  ;;  %v2015_v20 = vmul.f32 %v2009_v23, %v3584_v30 }
  0xe7   : > { %v2016_v11 = vmul.f32 %v2011_v1, %v3586_v3  ;;  %v2091_v29 = vrot.slane %v3866_v58, 4  ;;  %v2172_v59 = vsel %vm591_vm7, %v2170_v6, %v3830_v16  ;;  %v2333_v23 = vrot.slane %v3874_v47, 4 }
  0xe8   : > { %1333 = vrot.lane.b32.xlu1 %v3001_v40, %s3141_s26  ;;  %v1846_v40 = vsel %vm377_vm5, %v1844_v45, %v3766_v34  ;;  %v1715_v54 = vrot.slane %v3014_v14, 6  ;;  %v1773_v34 = vmul.f32 %v1768_v50, %v3808_v39  ;;  %v3021_v45 = vpack.c.bf16 %v1858_v61, %v1853_v36 }
  0xe9   : > { %v1852_v57 = vmul.f32 %v1846_v40, %v3584_v30  ;;  %v3022_v5 = vpack.c.bf16 %v1854_v19, %v1854_v19  ;;  %v2020_v37 = vcombine.high %v2015_v20, %v2015_v20  ;;  %v1981_v40 = vld [vmem:[#allocation2 + $0x10] sm:$0xf]  ;;  %v2178_v16 = vmul.f32 %v2172_v59, %v3584_v30 }
  0xea   : > { %1335 = vrot.lane.b32.xlu0 %v3002_v32, %s3141_s26  ;;  %v1772_v32 = vmul.f32 %v1766_v35, %v3584_v30  ;;  %v3890_v28 = vpop.permute.xlu0 %2249  ;;  %v1880_v55 = vrot.slane %v3021_v45, 6  ;;  %v2017_v18 = vmul.f32 %v2008_v0, %v1981_v40  ;;  %v2144_v45 = vld [vmem:[#allocation2 + $0x10] sm:$0xf]  ;;  %v3116_v40 = vld [vmem:[#allocation2] sm:$0xff] }
  0xeb   : > { %v1857_v8 = vcombine.high %v1852_v57, %v1852_v57  ;;  %v2253_v62 = vrot.slane %v3890_v28, 4  ;;  %v2183_v51 = vcombine.high %v2178_v16, %v2178_v16 }
  0xec   : > { %1466 = vrot.lane.b32.xlu1 %v3005_v7, %s3140_s25  ;;  %v1777_v49 = vcombine.high %v1772_v32, %v1772_v32  ;;  %v1717_v7 = vrot.slane %v3016_v46, 6  ;;  %v2021_v46 = vcombine.high %v2016_v11, %v2016_v11 }
  0xee   : > { %1468 = vrot.lane.b32.xlu0 %v3006_v56, %s3140_s25  ;;  %v1778_v56 = vcombine.high %v1773_v34, %v1773_v34  ;;  %v3017_v12 = vpack.c.bf16 %v1777_v49, %v1772_v32  ;;  %v3905_v35 = vpop.permute.xlu0 %2412 }
  0xf0   : > { %1470 = vrot.lane.b32.xlu1 %v3007_v22, %s3140_s25  ;;  %v3879_v22 = vpop.permute.xlu1 %2331  ;;  %v3018_v48 = vpack.c.bf16 %v1778_v56, %v1773_v34  ;;  %v3026_v34 = vpack.c.bf16 %v2020_v37, %v2015_v20 }
  0xf1   : > { %v2334_v1 = vrot.slane %v3879_v22, 4 }
  0xf2   : > { %1551 = vrot.lane.b32.xlu0 %v1548_v25, %s3136_s28  ;;  %v3020_v25 = vpack.c.bf16 %v1857_v8, %v1852_v57  ;;  %v2042_v0 = vrot.slane %v3026_v34, 6 }
  0xf4   : > { %1553 = vrot.lane.b32.xlu1 %v1549_v43, %s3136_s28  ;;  %v1931_v43 = vsel %vm462_vm2, %v1930_v9, %v3848_v26  ;;  %v1879_v42 = vrot.slane %v3020_v25, 6  ;;  %v3896_v17 = vpop.permute.xlu1 %2251  ;;  %v1881_v26 = vrot.slane %v3022_v5, 6 }
  0xf5   : > { %v1936_v13 = vmul.f32 %v1931_v43, %v3808_v39 }
  0xf6   : > { %1555 = vrot.lane.b32.xlu0 %v1550_v10, %s3136_s28  ;;  %v1935_v10 = vmul.f32 %v1929_v27, %v3584_v30 }
  0xf7   : > { %v1941_v14 = vcombine.high %v1936_v13, %v1936_v13 }
  0xf8   : > { %1633 = vrot.lane.b32.xlu1 %v3011_v24, %s3138_s14  ;;  %v1940_v21 = vcombine.high %v1935_v10, %v1935_v10  ;;  %v2090_v24 = vrot.slane %v3860_v53, 4  ;;  %v3910_v31 = vpop.permute.xlu1 %2414 }
  0xf9   : > { %v3024_v49 = vpack.c.bf16 %v1941_v14, %v1936_v13  ;;  %v2335_v14 = vsel %vm424_vm8, %v2333_v23, %v3874_v47 }
  0xfa   : > { %1635 = vrot.lane.b32.xlu0 %v3012_v2, %s3138_s14  ;;  %v1901_v2 = vld [vmem:[#allocation2 + $0x10] sm:$0xf]  ;;  %v2093_v32 = vsel %vm295_vm0, %v2090_v24, %v2091_v29  ;;  %v2092_v57 = vsel %vm629_vm3, %v2090_v24, %v3860_v53  ;;  %v3027_v53 = vpack.c.bf16 %v2021_v46, %v2016_v11  ;;  %v2180_v11 = vmul.f32 %v2171_v15, %v2144_v45 }
  0xfb   : > { %v1937_v50 = vmul.f32 %v1928_v52, %v1901_v2  ;;  %v2098_v38 = vmul.f32 %v2092_v57, %v3584_v30  ;;  %v3028_v52 = vpack.c.bf16 %v2017_v18, %v2017_v18 }
  0xfc   : > { %1637 = vrot.lane.b32.xlu1 %v3013_v41, %s3138_s14  ;;  %v3023_v41 = vpack.c.bf16 %v1940_v21, %v1935_v10  ;;  %v2043_v30 = vrot.slane %v3027_v53, 6  ;;  %v2255_v21 = vsel %vm506_vm4, %v2253_v62, %v3890_v28  ;;  %v3034_v18 = vpack.c.bf16 %v2180_v11, %v2180_v11 }
  0xfd   : > { %v2103_v61 = vcombine.high %v2098_v38, %v2098_v38  ;;  %v2044_v25 = vrot.slane %v3028_v52, 6 }
  0xfe   : > { %1718 = vrot.lane.b32.xlu0 %v1715_v54, %s3135_s24  ;;  %v2173_v54 = vsel %vm295_vm0, %v2170_v6, %v2171_v15  ;;  %v3032_v6 = vpack.c.bf16 %v2183_v51, %v2178_v16  ;;  %v2207_v53 = vrot.slane %v3034_v18, 6  ;;  %v2227_v16 = vld [vmem:[#allocation2 + $0x10] sm:$0xf] }
  0xff   : > { %v2174_v8 = vsel %vm591_vm7, %v2173_v54, %v3836_v33  ;;  %v3029_v5 = vpack.c.bf16 %v2103_v61, %v2098_v38 }
 0x100   : > { %1720 = vrot.lane.b32.xlu1 %v1716_v60, %s3135_s24  ;;  %v2094_v60 = vsel %vm629_vm3, %v2093_v32, %v3866_v58  ;;  %v2179_v33 = vmul.f32 %v2174_v8, %v3586_v3  ;;  %v2254_v3 = vrot.slane %v3896_v17, 4  ;;  %v2205_v54 = vrot.slane %v3032_v6, 6 }
 0x101   : > { %v2099_v58 = vmul.f32 %v2094_v60, %v3808_v39 }
 0x102   : > { %1722 = vrot.lane.b32.xlu0 %v1717_v7, %s3135_s24  ;;  %v3025_v7 = vpack.c.bf16 %v1937_v50, %v1937_v50  ;;  %v2184_v13 = vcombine.high %v2179_v33, %v2179_v33  ;;  %v2261_v50 = vmul.f32 %v3116_v40, %v2255_v21 }
 0x104   : > { %1799 = vrot.lane.b32.xlu1 %v3017_v12, %s3137_s7  ;;  %v3033_v46 = vpack.c.bf16 %v2184_v13, %v2179_v33  ;;  %v2266_v60 = vcombine.high %v2261_v50, %v2261_v50 }
 0x106   : > { %1801 = vrot.lane.b32.xlu0 %v3018_v48, %s3137_s7  ;;  %v2064_v48 = vld [vmem:[#allocation2 + $0x10] sm:$0xf]  ;;  %v2206_v38 = vrot.slane %v3033_v46, 6 }
 0x107   : > { %v2100_v10 = vmul.f32 %v2091_v29, %v2064_v48 }
 0x108   : > { %1803 = vrot.lane.b32.xlu1 %v3019_v44, %s3137_s7  ;;  %v2104_v44 = vcombine.high %v2099_v58, %v2099_v58 }
 0x109   : > { %v3031_v2 = vpack.c.bf16 %v2100_v10, %v2100_v10 }
 0x10a   : > { %1882 = vrot.lane.b32.xlu0 %v1879_v42, %s3132_s20  ;;  %v2256_v42 = vsel %vm295_vm0, %v2253_v62, %v2254_v3  ;;  %v3030_v29 = vpack.c.bf16 %v2104_v44, %v2099_v58  ;;  %v2417_v58 = vrot.slane %v3910_v31, 4  ;;  %v2263_v62 = vmul.f32 %v2254_v3, %v2227_v16 }
 0x10b   : > { %v2257_v15 = vsel %vm506_vm4, %v2256_v42, %v3896_v17  ;;  %v2341_v17 = vmul.f32 %v3116_v40, %v2335_v14 }
 0x10c   : > { %1884 = vrot.lane.b32.xlu1 %v1880_v55, %s3132_s20  ;;  %v2262_v34 = vmul.f32 %v2257_v15, %v3808_v39  ;;  %v3037_v11 = vpack.c.bf16 %v2263_v62, %v2263_v62 }
 0x10e   : > { %1886 = vrot.lane.b32.xlu0 %v1881_v26, %s3132_s20  ;;  %v2336_v26 = vsel %vm295_vm0, %v2333_v23, %v2334_v1  ;;  %v2267_v61 = vcombine.high %v2262_v34, %v2262_v34  ;;  %v2307_v23 = vld [vmem:[#allocation2 + $0x10] sm:$0xf] }
 0x10f   : > { %v2337_v47 = vsel %vm424_vm8, %v2336_v26, %v3879_v22  ;;  %v2343_v44 = vmul.f32 %v2334_v1, %v2307_v23 }
 0x110   : > { %v333_v36 = vpop.permute.xlu0 %332  ;;  %1962 = vrot.lane.b32.xlu1 %v3023_v41, %s3134_s13  ;;  %v3036_v42 = vpack.c.bf16 %v2267_v61, %v2262_v34 }
 0x111   : > { %v336_v56 = vrot.slane %v333_v36, 4  ;;  %v3040_v6 = vpack.c.bf16 %v2343_v44, %v2343_v44 }
 0x112   : > { %v3924_v4 = vpop.permute.xlu1 %330  ;;  %1964 = vrot.lane.b32.xlu0 %v3024_v49, %s3134_s13  ;;  %v3117_v49 = vld [vmem:[#allocation2 + $0x8] sm:$0xff] }
 0x113   : > { %v335_v63 = vrot.slane %v3924_v4, 4  ;;  %v2342_v59 = vmul.f32 %v3117_v49, %v2337_v47  ;;  %v2370_v46 = vrot.slane %v3040_v6, 6 }
 0x114   : > { %v501_v12 = vpop.permute.xlu0 %500  ;;  %1966 = vrot.lane.b32.xlu1 %v3025_v7, %s3134_s13  ;;  %v2416_v7 = vrot.slane %v3905_v35, 4 }
 0x115   : > { %v341_v9 = vsel %vm295_vm0, %v335_v63, %v336_v56  ;;  %v504_v24 = vrot.slane %v501_v12, 4  ;;  %v2346_v12 = vcombine.high %v2341_v17, %v2341_v17  ;;  %v2347_v48 = vcombine.high %v2342_v59, %v2342_v59 }
 0x116   : > { %v342_v27 = vsel %vm339_vm9, %v3924_v4, %v341_v9  ;;  %v3938_v19 = vpop.permute.xlu1 %418  ;;  %2045 = vrot.lane.b32.xlu0 %v2042_v0, %s3131_s19  ;;  %v2419_v4 = vsel %vm295_vm0, %v2416_v7, %v2417_v58 }
 0x117   : > { %346 = vst [vmem:[#allocation3 + $0x8] sm:$0x33] %v342_v27  ;;  %v3038_v10 = vpack.c.bf16 %v2346_v12, %v2341_v17  ;;  %v422_v17 = vrot.slane %v3938_v19, 4 }
 0x118   : > { %v668_v43 = vpop.permute.xlu0 %667  ;;  %2047 = vrot.lane.b32.xlu1 %v2043_v30, %s3131_s19 }
 0x119   : > { %v671_v52 = vrot.slane %v668_v43, 4  ;;  %v2418_v43 = vsel %vm339_vm9, %v2416_v7, %v3905_v35  ;;  %v2368_v26 = vrot.slane %v3038_v10, 6 }
 0x11a   : > { %v3946_v20 = vpop.permute.xlu1 %498  ;;  %2049 = vrot.lane.b32.xlu0 %v2044_v25, %s3131_s19  ;;  %v3035_v25 = vpack.c.bf16 %v2266_v60, %v2261_v50  ;;  %v2424_v35 = vmul.f32 %v3116_v40, %v2418_v43 }
 0x11b   : > { %v503_v55 = vrot.slane %v3946_v20, 4 }
 0x11c   : > { %v3955_v37 = vpop.permute.xlu0 %834  ;;  %2125 = vrot.lane.b32.xlu1 %v3029_v5, %s3133_s27 }
 0x11d   : > { %v508_v28 = vsel %vm295_vm0, %v503_v55, %v504_v24  ;;  %v3039_v24 = vpack.c.bf16 %v2347_v48, %v2342_v59  ;;  %v838_v22 = vrot.slane %v3955_v37, 4 }
 0x11e   : > { %v509_v41 = vsel %vm506_vm4, %v3946_v20, %v508_v28  ;;  %v3965_v32 = vpop.permute.xlu1 %585  ;;  %2127 = vrot.lane.b32.xlu0 %v3030_v29, %s3133_s27  ;;  %v2420_v20 = vsel %vm339_vm9, %v2419_v4, %v3910_v31 }
 0x11f   : > { %513 = vst [vmem:[#allocation3 + $0x18] sm:$0x33] %v509_v41  ;;  %v2425_v31 = vmul.f32 %v2420_v20, %v3808_v39  ;;  %v2369_v50 = vrot.slane %v3039_v24, 6 }
 0x120   : > { %v329_v57 = vpop.permute.xlu0 %328  ;;  %2129 = vrot.lane.b32.xlu1 %v3031_v2, %s3133_s27  ;;  %v2429_v2 = vcombine.high %v2424_v35, %v2424_v35 }
 0x121   : > { %v334_v36 = vrot.slane %v329_v57, 4  ;;  %v2430_v39 = vcombine.high %v2425_v31, %v2425_v31 }
 0x122   : > { %v666_v8 = vpop.permute.xlu1 %665  ;;  %2208 = vrot.lane.b32.xlu0 %v2205_v54, %s3128_s8  ;;  %v2390_v54 = vld [vmem:[#allocation2 + $0x10] sm:$0xf] }
 0x123   : > { %v338_v56 = vsel %vm295_vm0, %v334_v36, %v335_v63  ;;  %v670_v0 = vrot.slane %v666_v8, 4  ;;  %v2426_v34 = vmul.f32 %v2417_v58, %v2390_v54  ;;  %v3041_v36 = vpack.c.bf16 %v2429_v2, %v2424_v35 }
 0x124   : > { %v340_v33 = vsel %vm339_vm9, %v329_v57, %v338_v56  ;;  %v497_v9 = vpop.permute.xlu0 %496  ;;  %2210 = vrot.lane.b32.xlu1 %v2206_v38, %s3128_s8  ;;  %v3042_v38 = vpack.c.bf16 %v2430_v39, %v2425_v31 }
 0x125   : > { %345 = vst [vmem:[#allocation3] sm:$0x33] %v340_v33  ;;  %v675_v27 = vsel %vm295_vm0, %v670_v0, %v671_v52  ;;  %v502_v30 = vrot.slane %v497_v9, 4  ;;  %v3043_v56 = vpack.c.bf16 %v2426_v34, %v2426_v34 }
 0x126   : > { %v676_v63 = vsel %vm629_vm3, %v666_v8, %v675_v27  ;;  %v3983_v51 = vpop.permute.xlu1 %752  ;;  %2212 = vrot.lane.b32.xlu0 %v2207_v53, %s3128_s8  ;;  %v589_v53 = vrot.slane %v3965_v32, 4 }
 0x127   : > { %680 = vst [vmem:[#allocation3 + $0x28] sm:$0x33] %v676_v63  ;;  %v505_v3 = vsel %vm295_vm0, %v502_v30, %v503_v55  ;;  %v756_v32 = vrot.slane %v3983_v51, 4 }
 0x128   : > { %v507_v45 = vsel %vm506_vm4, %v497_v9, %v505_v3  ;;  %v664_v5 = vpop.permute.xlu0 %663  ;;  %2288 = vrot.lane.b32.xlu1 %v3035_v25, %s3130_s16 }
 0x129   : > { %512 = vst [vmem:[#allocation3 + $0x10] sm:$0x33] %v507_v45  ;;  %v669_v13 = vrot.slane %v664_v5, 4 }
 0x12a   : > { %v833_v21 = vpop.permute.xlu1 %832  ;;  %2290 = vrot.lane.b32.xlu0 %v3036_v42, %s3130_s16 }
 0x12b   : > { %v672_v1 = vsel %vm295_vm0, %v669_v13, %v670_v0  ;;  %v837_v55 = vrot.slane %v833_v21, 4 }
 0x12c   : > { %v674_v29 = vsel %vm629_vm3, %v664_v5, %v672_v1  ;;  %v831_v14 = vpop.permute.xlu0 %830  ;;  %2292 = vrot.lane.b32.xlu1 %v3037_v11, %s3130_s16 }
 0x12d   : > { %679 = vst [vmem:[#allocation3 + $0x20] sm:$0x33] %v674_v29  ;;  %v842_v15 = vsel %vm295_vm0, %v837_v55, %v838_v22  ;;  %v836_v28 = vrot.slane %v831_v14, 4 }
 0x12e   : > { %v843_v40 = vsel %vm462_vm2, %v833_v21, %v842_v15  ;;  %v920_v37 = vpop.permute.xlu1 %919  ;;  %2371 = vrot.lane.b32.xlu0 %v2368_v26, %s3127_s30 }
 0x12f   : > { %847 = vst [vmem:[#allocation3 + $0x38] sm:$0x33] %v843_v40  ;;  %v839_v41 = vsel %vm295_vm0, %v836_v28, %v837_v55  ;;  %v923_v23 = vrot.slane %v920_v37, 4 }
 0x130   : > { %v841_v18 = vsel %vm462_vm2, %v831_v14, %v839_v41  ;;  %v417_v47 = vpop.permute.xlu0 %416  ;;  %2373 = vrot.lane.b32.xlu1 %v2369_v50, %s3127_s30 }
 0x131   : > { %846 = vst [vmem:[#allocation3 + $0x30] sm:$0x33] %v841_v18  ;;  %v421_v57 = vrot.slane %v417_v47, 4 }
 0x132   : > { %v415_v49 = vpop.permute.xlu1 %414  ;;  %2375 = vrot.lane.b32.xlu0 %v2370_v46, %s3127_s30 }
 0x133   : > { %v426_v59 = vsel %vm295_vm0, %v421_v57, %v422_v17  ;;  %v420_v60 = vrot.slane %v415_v49, 4 }
 0x134   : > { %v427_v7 = vsel %vm424_vm8, %v417_v47, %v426_v59  ;;  %v584_v8 = vpop.permute.xlu0 %583  ;;  %2451 = vrot.lane.b32.xlu1 %v3041_v36, %s3129_s11 }
 0x135   : > { %431 = vst [vmem:[#allocation3 + $0x8] sm:$0xcc] %v427_v7  ;;  %v423_v19 = vsel %vm295_vm0, %v420_v60, %v421_v57  ;;  %v588_v52 = vrot.slane %v584_v8, 4 }
 0x136   : > { %v425_v0 = vsel %vm424_vm8, %v415_v49, %v423_v19  ;;  %v582_v16 = vpop.permute.xlu1 %581  ;;  %2453 = vrot.lane.b32.xlu0 %v3042_v38, %s3129_s11 }
 0x137   : > { %430 = vst [vmem:[#allocation3] sm:$0xcc] %v425_v0  ;;  %v593_v12 = vsel %vm295_vm0, %v588_v52, %v589_v53  ;;  %v587_v58 = vrot.slane %v582_v16, 4 }
 0x138   : > { %v594_v33 = vsel %vm591_vm7, %v584_v8, %v593_v12  ;;  %v751_v9 = vpop.permute.xlu0 %750  ;;  %2455 = vrot.lane.b32.xlu1 %v3043_v56, %s3129_s11 }
 0x139   : > { %598 = vst [vmem:[#allocation3 + $0x18] sm:$0xcc] %v594_v33  ;;  %v590_v61 = vsel %vm295_vm0, %v587_v58, %v588_v52  ;;  %v755_v62 = vrot.slane %v751_v9, 4 }
 0x13a   : > { %v592_v27 = vsel %vm591_vm7, %v582_v16, %v590_v61  ;;  %v749_v30 = vpop.permute.xlu1 %748 }
 0x13b   : > { %597 = vst [vmem:[#allocation3 + $0x10] sm:$0xcc] %v592_v27  ;;  %v760_v25 = vsel %vm295_vm0, %v755_v62, %v756_v32  ;;  %v754_v4 = vrot.slane %v749_v30, 4 }
 0x13c   : > { %v761_v63 = vsel %vm544_vm6, %v751_v9, %v760_v25  ;;  %v918_v48 = vpop.permute.xlu0 %917 }
 0x13d   : > { %765 = vst [vmem:[#allocation3 + $0x28] sm:$0xcc] %v761_v63  ;;  %v757_v43 = vsel %vm295_vm0, %v754_v4, %v755_v62  ;;  %v922_v3 = vrot.slane %v918_v48, 4 }
 0x13e   : > { %v759_v51 = vsel %vm544_vm6, %v749_v30, %v757_v43  ;;  %v916_v44 = vpop.permute.xlu1 %915 }
 0x13f   : > { %764 = vst [vmem:[#allocation3 + $0x20] sm:$0xcc] %v759_v51  ;;  %v927_v10 = vsel %vm295_vm0, %v922_v3, %v923_v23  ;;  %v921_v45 = vrot.slane %v916_v44, 4 }
 0x140   : > { %v928_v5 = vsel %vm377_vm5, %v918_v48, %v927_v10  ;;  %v998_v42 = vpop.permute.xlu0 %997  ;;  %v3074_v20 = vld [vmem:[#allocation3 + $0xc] ss:$16 sps:$4 sm:$0xff]   ;;  %v3076_v13 = vld [vmem:[#allocation3 + $0x8] ss:$16 sps:$4 sm:$0xff]  }
 0x141   : > { %932 = vst [vmem:[#allocation3 + $0x38] sm:$0xcc] %v928_v5  ;;  %v924_v11 = vsel %vm295_vm0, %v921_v45, %v922_v3  ;;  %2691 = vmatprep.subr.bf16.mxu1 %v3074_v20  ;;  %v1003_v1 = vrot.slane %v998_v42, 4 }
 0x142   : > { %v926_v35 = vsel %vm377_vm5, %v916_v44, %v924_v11  ;;  %v1000_v21 = vpop.permute.xlu1 %999  ;;  %v3077_v24 = vld [vmem:[#allocation3 + $0x4] ss:$16 sps:$4 sm:$0xff]   ;;  %v3079_v22 = vld [vmem:[#allocation3] ss:$16 sps:$4 sm:$0xff]   ;;  %2692 = vmatpush1.bf16.msra.mxu1 %v3076_v13 }
 0x143   : > { %931 = vst [vmem:[#allocation3 + $0x30] sm:$0xcc] %v926_v35  ;;  %v1004_v55 = vrot.slane %v1000_v21, 4  ;;  %2650 = vmatprep.subr.bf16.mxu0 %v3077_v24 }
 0x144   : > { %v1002_v6 = vpop.permute.xlu0 %1001  ;;  %2651 = vmatpush1.bf16.msra.mxu0 %v3079_v22 }
 0x145   : > { %v1006_v26 = vsel %vm295_vm0, %v1003_v1, %v1004_v55  ;;  %v1005_v29 = vrot.slane %v1002_v6, 4 }
 0x146   : > { %v1008_v14 = vsel %vm293_vm1, %v998_v42, %v1006_v26  ;;  %v1083_v31 = vpop.permute.xlu1 %1082 }
 0x147   : > { %1013 = vst [vmem:[#allocation3 + $0x40] sm:$0x33] %v1008_v14  ;;  %v1009_v15 = vsel %vm295_vm0, %v1004_v55, %v1005_v29  ;;  %v1088_v50 = vrot.slane %v1083_v31, 4 }
 0x148   : > { %v1010_v28 = vsel %vm293_vm1, %v1000_v21, %v1009_v15  ;;  %v1085_v2 = vpop.permute.xlu0 %1084  ;;  %v3080_v40 = vld [vmem:[#allocation3 + $0x2c] ss:$16 sps:$4 sm:$0xff]   ;;  %v3082_v37 = vld [vmem:[#allocation3 + $0x28] ss:$16 sps:$4 sm:$0xff]  }
 0x149   : > { %1014 = vst [vmem:[#allocation3 + $0x48] sm:$0x33] %v1010_v28  ;;  %v1089_v41 = vrot.slane %v1085_v2, 4  ;;  %2693 = vmatprep.subr.bf16.mxu1 %v3080_v40 }
 0x14a   : > { %v1087_v46 = vpop.permute.xlu1 %1086  ;;  %v3083_v18 = vld [vmem:[#allocation3 + $0x24] ss:$16 sps:$4 sm:$0xff]   ;;  %v3085_v47 = vld [vmem:[#allocation3 + $0x20] ss:$16 sps:$4 sm:$0xff]   ;;  %2694 = vmatpush1.bf16.msra.mxu1 %v3082_v37 }
 0x14b   : > { %v1091_v39 = vsel %vm295_vm0, %v1088_v50, %v1089_v41  ;;  %v1090_v54 = vrot.slane %v1087_v46, 4  ;;  %2652 = vmatprep.subr.bf16.mxu0 %v3083_v18 }
 0x14c   : > { %v1093_v17 = vsel %vm1092_vm11, %v1083_v31, %v1091_v39  ;;  %v1165_v57 = vpop.permute.xlu0 %1164  ;;  %2653 = vmatpush1.bf16.msra.mxu0 %v3085_v47 }
 0x14d   : > { %1098 = vst [vmem:[#allocation3 + $0x40] sm:$0xcc] %v1093_v17  ;;  %v1094_v34 = vsel %vm295_vm0, %v1089_v41, %v1090_v54  ;;  %v1170_v59 = vrot.slane %v1165_v57, 4 }
 0x14e   : > { %v1095_v36 = vsel %vm1092_vm11, %v1085_v2, %v1094_v34  ;;  %v1167_v49 = vpop.permute.xlu1 %1166 }
 0x14f   : > { %1099 = vst [vmem:[#allocation3 + $0x48] sm:$0xcc] %v1095_v36  ;;  %v1171_v60 = vrot.slane %v1167_v49, 4 }
 0x150   : > { %v1169_v7 = vpop.permute.xlu0 %1168 }
 0x151   : > { %v1173_v8 = vsel %vm295_vm0, %v1170_v59, %v1171_v60  ;;  %v1172_v38 = vrot.slane %v1169_v7, 4 }
 0x152   : > { %v1175_v53 = vsel %vm1174_vm10, %v1165_v57, %v1173_v8  ;;  %v1250_v19 = vpop.permute.xlu1 %1249 }
 0x153   : > { %1180 = vst [vmem:[#allocation3 + $0x50] sm:$0x33] %v1175_v53  ;;  %v1176_v52 = vsel %vm295_vm0, %v1171_v60, %v1172_v38  ;;  %v1255_v16 = vrot.slane %v1250_v19, 4 }
 0x154   : > { %v1177_v56 = vsel %vm1174_vm10, %v1167_v49, %v1176_v52  ;;  %v1252_v0 = vpop.permute.xlu0 %1251  ;;  %vm4120_vm10 = vcmask 982016  }
 0x155   : > { %1181 = vst [vmem:[#allocation3 + $0x58] sm:$0x33] %v1177_v56  ;;  %v1256_v12 = vrot.slane %v1252_v0, 4  ;;  %vm4121_vm11 = vmmov %vm4120_vm10 }
 0x156   : > { %v1254_v58 = vpop.permute.xlu1 %1253 }
 0x157   : > { %v1258_v33 = vsel %vm295_vm0, %v1255_v16, %v1256_v12  ;;  %v1257_v9 = vrot.slane %v1254_v58, 4 }
 0x158   : > { %v1260_v32 = vsel %vm1259_vm15, %v1250_v19, %v1258_v33  ;;  %v1332_v61 = vpop.permute.xlu0 %1331 }
 0x159   : > { %1265 = vst [vmem:[#allocation3 + $0x50] sm:$0xcc] %v1260_v32  ;;  %v1261_v62 = vsel %vm295_vm0, %v1256_v12, %v1257_v9  ;;  %v1337_v25 = vrot.slane %v1332_v61, 4 }
 0x15a   : > { %v1262_v27 = vsel %vm1259_vm15, %v1252_v0, %v1261_v62  ;;  %v1334_v30 = vpop.permute.xlu1 %1333 }
 0x15b   : > { %1266 = vst [vmem:[#allocation3 + $0x58] sm:$0xcc] %v1262_v27  ;;  %v1338_v4 = vrot.slane %v1334_v30, 4 }
 0x15c   : > { %v1336_v63 = vpop.permute.xlu0 %1335 }
 0x15d   : > { %v1340_v48 = vsel %vm295_vm0, %v1337_v25, %v1338_v4  ;;  %v1339_v23 = vrot.slane %v1336_v63, 4 }
 0x15e   : > { %v1342_v43 = vsel %vm1341_vm14, %v1332_v61, %v1340_v48  ;;  %v1467_v3 = vpop.permute.xlu1 %1466 }
 0x15f   : > { %1347 = vst [vmem:[#allocation3 + $0x60] sm:$0x33] %v1342_v43  ;;  %v1343_v51 = vsel %vm295_vm0, %v1338_v4, %v1339_v23  ;;  %v1472_v42 = vrot.slane %v1467_v3, 4 }
 0x160   : > { %v1344_v44 = vsel %vm1341_vm14, %v1334_v30, %v1343_v51  ;;  %v1469_v10 = vpop.permute.xlu0 %1468  ;;  %v3086_v45 = vld [vmem:[#allocation3 + $0x44] ss:$16 sps:$4 sm:$0xff]   ;;  %v3088_v5 = vld [vmem:[#allocation3 + $0x40] ss:$16 sps:$4 sm:$0xff]  }
 0x161   : > { %1348 = vst [vmem:[#allocation3 + $0x68] sm:$0x33] %v1344_v44  ;;  %v1473_v20 = vrot.slane %v1469_v10, 4  ;;  %2654 = vmatprep.subr.bf16.mxu0 %v3086_v45 }
 0x162   : > { %v1471_v13 = vpop.permute.xlu1 %1470  ;;  %v3089_v11 = vld [vmem:[#allocation3 + $0x4c] ss:$16 sps:$4 sm:$0xff]   ;;  %v3091_v35 = vld [vmem:[#allocation3 + $0x48] ss:$16 sps:$4 sm:$0xff]   ;;  %2655 = vmatpush1.bf16.msra.mxu0 %v3088_v5 }
 0x163   : > { %v1475_v21 = vsel %vm295_vm0, %v1472_v42, %v1473_v20  ;;  %v1474_v24 = vrot.slane %v1471_v13, 4  ;;  %2695 = vmatprep.subr.bf16.mxu1 %v3089_v11 }
 0x164   : > { %v1477_v22 = vsel %vm1297_vm13, %v1467_v3, %v1475_v21  ;;  %v1552_v1 = vpop.permute.xlu0 %1551  ;;  %2696 = vmatpush1.bf16.msra.mxu1 %v3091_v35 }
 0x165   : > { %1482 = vst [vmem:[#allocation3 + $0x70] sm:$0x33] %v1477_v22  ;;  %v1478_v55 = vsel %vm295_vm0, %v1473_v20, %v1474_v24  ;;  %v1557_v29 = vrot.slane %v1552_v1, 4 }
 0x166   : > { %v1479_v6 = vsel %vm1297_vm13, %v1469_v10, %v1478_v55  ;;  %v1554_v26 = vpop.permute.xlu1 %1553 }
 0x167   : > { %1483 = vst [vmem:[#allocation3 + $0x78] sm:$0x33] %v1479_v6  ;;  %v1558_v14 = vrot.slane %v1554_v26, 4 }
 0x168   : > { %v1556_v31 = vpop.permute.xlu0 %1555 }
 0x169   : > { %v1560_v15 = vsel %vm295_vm0, %v1557_v29, %v1558_v14  ;;  %v1559_v28 = vrot.slane %v1556_v31, 4 }
 0x16a   : > { %v1562_v2 = vsel %vm1212_vm12, %v1552_v1, %v1560_v15  ;;  %v1634_v40 = vpop.permute.xlu1 %1633 }
 0x16b   : > { %1567 = vst [vmem:[#allocation3 + $0x70] sm:$0xcc] %v1562_v2  ;;  %v1563_v37 = vsel %vm295_vm0, %v1558_v14, %v1559_v28  ;;  %v1639_v46 = vrot.slane %v1634_v40, 4 }
 0x16c   : > { %v1564_v50 = vsel %vm1212_vm12, %v1554_v26, %v1563_v37  ;;  %v1636_v41 = vpop.permute.xlu0 %1635  ;;  %vm4122_vm12 = vcmask 973824  }
 0x16d   : > { %1568 = vst [vmem:[#allocation3 + $0x78] sm:$0xcc] %v1564_v50  ;;  %v1640_v18 = vrot.slane %v1636_v41, 4  ;;  %vm4123_vm13 = vmmov %vm4122_vm12 }
 0x16e   : > { %v1638_v47 = vpop.permute.xlu1 %1637 }
 0x16f   : > { %v1642_v39 = vsel %vm295_vm0, %v1639_v46, %v1640_v18  ;;  %v1641_v54 = vrot.slane %v1638_v47, 4 }
 0x170   : > { %v1644_v17 = vsel %vm4120_vm10, %v1634_v40, %v1642_v39  ;;  %v1719_v57 = vpop.permute.xlu0 %1718 }
 0x171   : > { %1649 = vst [vmem:[#allocation3 + $0x80] sm:$0x33] %v1644_v17  ;;  %v1645_v34 = vsel %vm295_vm0, %v1640_v18, %v1641_v54  ;;  %v1724_v7 = vrot.slane %v1719_v57, 4 }
 0x172   : > { %v1646_v36 = vsel %vm4121_vm11, %v1636_v41, %v1645_v34  ;;  %v1721_v49 = vpop.permute.xlu1 %1720  ;;  %v3092_v59 = vld [vmem:[#allocation3 + $0x64] ss:$16 sps:$4 sm:$0xff]   ;;  %v3094_v60 = vld [vmem:[#allocation3 + $0x60] ss:$16 sps:$4 sm:$0xff]  }
 0x173   : > { %1650 = vst [vmem:[#allocation3 + $0x88] sm:$0x33] %v1646_v36  ;;  %v1725_v8 = vrot.slane %v1721_v49, 4  ;;  %2656 = vmatprep.subr.bf16.mxu0 %v3092_v59 }
 0x174   : > { %v1723_v38 = vpop.permute.xlu0 %1722  ;;  %v3095_v53 = vld [vmem:[#allocation3 + $0x6c] ss:$16 sps:$4 sm:$0xff]   ;;  %v3097_v19 = vld [vmem:[#allocation3 + $0x68] ss:$16 sps:$4 sm:$0xff]   ;;  %2657 = vmatpush1.bf16.msra.mxu0 %v3094_v60 }
 0x175   : > { %v1727_v52 = vsel %vm295_vm0, %v1724_v7, %v1725_v8  ;;  %v1726_v56 = vrot.slane %v1723_v38, 4  ;;  %2697 = vmatprep.subr.bf16.mxu1 %v3095_v53 }
 0x176   : > { %v1729_v0 = vsel %vm4122_vm12, %v1719_v57, %v1727_v52  ;;  %v1800_v16 = vpop.permute.xlu1 %1799  ;;  %2698 = vmatpush1.bf16.msra.mxu1 %v3097_v19 }
 0x177   : > { %1734 = vst [vmem:[#allocation3 + $0x80] sm:$0xcc] %v1729_v0  ;;  %v1730_v12 = vsel %vm295_vm0, %v1725_v8, %v1726_v56  ;;  %v1805_v9 = vrot.slane %v1800_v16, 4 }
 0x178   : > { %v1731_v58 = vsel %vm4123_vm13, %v1721_v49, %v1730_v12  ;;  %v1802_v33 = vpop.permute.xlu0 %1801 }
 0x179   : > { %1735 = vst [vmem:[#allocation3 + $0x88] sm:$0xcc] %v1731_v58  ;;  %v1806_v32 = vrot.slane %v1802_v33, 4 }
 0x17a   : > { %v1804_v61 = vpop.permute.xlu1 %1803 }
 0x17b   : > { %v1808_v62 = vsel %vm295_vm0, %v1805_v9, %v1806_v32  ;;  %v1807_v27 = vrot.slane %v1804_v61, 4 }
 0x17c   : > { %v1809_v30 = vsel %vm339_vm9, %v1800_v16, %v1808_v62  ;;  %v1883_v25 = vpop.permute.xlu0 %1882 }
 0x17d   : > { %1814 = vst [vmem:[#allocation3 + $0x90] sm:$0x33] %v1809_v30  ;;  %v1810_v4 = vsel %vm295_vm0, %v1806_v32, %v1807_v27  ;;  %v1888_v23 = vrot.slane %v1883_v25, 4 }
 0x17e   : > { %v1811_v63 = vsel %vm339_vm9, %v1802_v33, %v1810_v4  ;;  %v1885_v48 = vpop.permute.xlu1 %1884 }
 0x17f   : > { %1815 = vst [vmem:[#allocation3 + $0x98] sm:$0x33] %v1811_v63  ;;  %v1889_v43 = vrot.slane %v1885_v48, 4 }
 0x180   : > { %v1887_v3 = vpop.permute.xlu0 %1886 }
 0x181   : > { %v1891_v51 = vsel %vm295_vm0, %v1888_v23, %v1889_v43  ;;  %v1890_v44 = vrot.slane %v1887_v3, 4 }
 0x182   : > { %v1892_v10 = vsel %vm424_vm8, %v1883_v25, %v1891_v51  ;;  %v1963_v45 = vpop.permute.xlu1 %1962 }
 0x183   : > { %1897 = vst [vmem:[#allocation3 + $0x90] sm:$0xcc] %v1892_v10  ;;  %v1893_v5 = vsel %vm295_vm0, %v1889_v43, %v1890_v44  ;;  %v1968_v13 = vrot.slane %v1963_v45, 4 }
 0x184   : > { %v1894_v42 = vsel %vm424_vm8, %v1885_v48, %v1893_v5  ;;  %v1965_v20 = vpop.permute.xlu0 %1964 }
 0x185   : > { %1898 = vst [vmem:[#allocation3 + $0x98] sm:$0xcc] %v1894_v42  ;;  %v1969_v11 = vrot.slane %v1965_v20, 4 }
 0x186   : > { %v1967_v35 = vpop.permute.xlu1 %1966 }
 0x187   : > { %v1971_v21 = vsel %vm295_vm0, %v1968_v13, %v1969_v11  ;;  %v1970_v24 = vrot.slane %v1967_v35, 4 }
 0x188   : > { %v1972_v22 = vsel %vm506_vm4, %v1963_v45, %v1971_v21  ;;  %v2046_v1 = vpop.permute.xlu0 %2045 }
 0x189   : > { %1977 = vst [vmem:[#allocation3 + $0xa0] sm:$0x33] %v1972_v22  ;;  %v1973_v55 = vsel %vm295_vm0, %v1969_v11, %v1970_v24  ;;  %v2051_v31 = vrot.slane %v2046_v1, 4 }
 0x18a   : > { %v1974_v6 = vsel %vm506_vm4, %v1965_v20, %v1973_v55  ;;  %v2048_v26 = vpop.permute.xlu1 %2047  ;;  %v3098_v29 = vld [vmem:[#allocation3 + $0x84] ss:$16 sps:$4 sm:$0xff]   ;;  %v3100_v14 = vld [vmem:[#allocation3 + $0x80] ss:$16 sps:$4 sm:$0xff]  }
 0x18b   : > { %1978 = vst [vmem:[#allocation3 + $0xa8] sm:$0x33] %v1974_v6  ;;  %v2052_v15 = vrot.slane %v2048_v26, 4  ;;  %2658 = vmatprep.subr.bf16.mxu0 %v3098_v29 }
 0x18c   : > { %v2050_v28 = vpop.permute.xlu0 %2049  ;;  %v3101_v2 = vld [vmem:[#allocation3 + $0x8c] ss:$16 sps:$4 sm:$0xff]   ;;  %v3103_v40 = vld [vmem:[#allocation3 + $0x88] ss:$16 sps:$4 sm:$0xff]   ;;  %2659 = vmatpush1.bf16.msra.mxu0 %v3100_v14 }
 0x18d   : > { %v2054_v37 = vsel %vm295_vm0, %v2051_v31, %v2052_v15  ;;  %v2053_v50 = vrot.slane %v2050_v28, 4  ;;  %2699 = vmatprep.subr.bf16.mxu1 %v3101_v2 }
 0x18e   : > { %v2055_v41 = vsel %vm591_vm7, %v2046_v1, %v2054_v37  ;;  %v2126_v46 = vpop.permute.xlu1 %2125  ;;  %2700 = vmatpush1.bf16.msra.mxu1 %v3103_v40  ;;  %v2468_v37 = vld [vmem:[%s4115_s3] sm:$0x3] }
 0x18f   : > { %2060 = vst [vmem:[#allocation3 + $0xa0] sm:$0xcc] %v2055_v41  ;;  %v2056_v18 = vsel %vm295_vm0, %v2052_v15, %v2053_v50  ;;  %v2131_v54 = vrot.slane %v2126_v46, 4 }
 0x190   : > { %v2057_v47 = vsel %vm591_vm7, %v2048_v26, %v2056_v18  ;;  %v2128_v39 = vpop.permute.xlu0 %2127 }
 0x191   : > { %2061 = vst [vmem:[#allocation3 + $0xa8] sm:$0xcc] %v2057_v47  ;;  %v2132_v17 = vrot.slane %v2128_v39, 4 }
 0x192   : > { %v2130_v57 = vpop.permute.xlu1 %2129 }
 0x193   : > { %v2134_v34 = vsel %vm295_vm0, %v2131_v54, %v2132_v17  ;;  %v2133_v36 = vrot.slane %v2130_v57, 4 }
 0x194   : > { %v2135_v49 = vsel %vm629_vm3, %v2126_v46, %v2134_v34  ;;  %v2209_v59 = vpop.permute.xlu0 %2208 }
 0x195   : > { %2140 = vst [vmem:[#allocation3 + $0xb0] sm:$0x33] %v2135_v49  ;;  %v2136_v60 = vsel %vm295_vm0, %v2132_v17, %v2133_v36  ;;  %v2214_v38 = vrot.slane %v2209_v59, 4 }
 0x196   : > { %v2137_v7 = vsel %vm629_vm3, %v2128_v39, %v2136_v60  ;;  %v2211_v8 = vpop.permute.xlu1 %2210  ;;  %vm2633_vm3 = vcmask 883712  }
 0x197   : > { %2141 = vst [vmem:[#allocation3 + $0xb8] sm:$0x33] %v2137_v7  ;;  %v2215_v53 = vrot.slane %v2211_v8, 4 }
 0x198   : > { %v2213_v19 = vpop.permute.xlu0 %2212 }
 0x199   : > { %v2217_v52 = vsel %vm295_vm0, %v2214_v38, %v2215_v53  ;;  %v2216_v56 = vrot.slane %v2213_v19, 4 }
 0x19a   : > { %v2218_v0 = vsel %vm544_vm6, %v2209_v59, %v2217_v52  ;;  %v2289_v16 = vpop.permute.xlu1 %2288 }
 0x19b   : > { %2223 = vst [vmem:[#allocation3 + $0xb0] sm:$0xcc] %v2218_v0  ;;  %v2219_v12 = vsel %vm295_vm0, %v2215_v53, %v2216_v56  ;;  %v2294_v9 = vrot.slane %v2289_v16, 4 }
 0x19c   : > { %v2220_v58 = vsel %vm544_vm6, %v2211_v8, %v2219_v12  ;;  %v2291_v33 = vpop.permute.xlu0 %2290 }
 0x19d   : > { %2224 = vst [vmem:[#allocation3 + $0xb8] sm:$0xcc] %v2220_v58  ;;  %v2295_v32 = vrot.slane %v2291_v33, 4 }
 0x19e   : > { %v2293_v61 = vpop.permute.xlu1 %2292 }
 0x19f   : > { %v2297_v62 = vsel %vm295_vm0, %v2294_v9, %v2295_v32  ;;  %v2296_v27 = vrot.slane %v2293_v61, 4 }
 0x1a0   : > { %v2298_v30 = vsel %vm462_vm2, %v2289_v16, %v2297_v62  ;;  %v2372_v25 = vpop.permute.xlu0 %2371 }
 0x1a1   : > { %2303 = vst [vmem:[#allocation3 + $0xc0] sm:$0x33] %v2298_v30  ;;  %v2299_v4 = vsel %vm295_vm0, %v2295_v32, %v2296_v27  ;;  %v2377_v3 = vrot.slane %v2372_v25, 4 }
 0x1a2   : > { %v2300_v63 = vsel %vm462_vm2, %v2291_v33, %v2299_v4  ;;  %v2374_v48 = vpop.permute.xlu1 %2373  ;;  %v3104_v23 = vld [vmem:[#allocation3 + $0xa4] ss:$16 sps:$4 sm:$0xff]   ;;  %v3106_v43 = vld [vmem:[#allocation3 + $0xa0] ss:$16 sps:$4 sm:$0xff]   ;;  %vm2637_vm2 = vcmask 1045504  }
 0x1a3   : > { %2304 = vst [vmem:[#allocation3 + $0xc8] sm:$0x33] %v2300_v63  ;;  %v2378_v51 = vrot.slane %v2374_v48, 4  ;;  %2660 = vmatprep.subr.bf16.mxu0 %v3104_v23 }
 0x1a4   : > { %v2376_v44 = vpop.permute.xlu0 %2375  ;;  %v3107_v10 = vld [vmem:[#allocation3 + $0xac] ss:$16 sps:$4 sm:$0xff]   ;;  %v3109_v45 = vld [vmem:[#allocation3 + $0xa8] ss:$16 sps:$4 sm:$0xff]   ;;  %2661 = vmatpush1.bf16.msra.mxu0 %v3106_v43 }
 0x1a5   : > { %v2380_v5 = vsel %vm295_vm0, %v2377_v3, %v2378_v51  ;;  %v2379_v42 = vrot.slane %v2376_v44, 4  ;;  %2701 = vmatprep.subr.bf16.mxu1 %v3107_v10 }
 0x1a6   : > { %v2381_v20 = vsel %vm377_vm5, %v2372_v25, %v2380_v5  ;;  %v2452_v13 = vpop.permute.xlu1 %2451  ;;  %2702 = vmatpush1.bf16.msra.mxu1 %v3109_v45 }
 0x1a7   : > { %2386 = vst [vmem:[#allocation3 + $0xc0] sm:$0xcc] %v2381_v20  ;;  %v2382_v11 = vsel %vm295_vm0, %v2378_v51, %v2379_v42  ;;  %v2457_v24 = vrot.slane %v2452_v13, 4 }
 0x1a8   : > { %v2383_v35 = vsel %vm377_vm5, %v2374_v48, %v2382_v11  ;;  %v2454_v21 = vpop.permute.xlu0 %2453 }
 0x1a9   : > { %2387 = vst [vmem:[#allocation3 + $0xc8] sm:$0xcc] %v2383_v35  ;;  %v2458_v22 = vrot.slane %v2454_v21, 4 }
 0x1aa   : > { %v2456_v1 = vpop.permute.xlu1 %2455 }
 0x1ab   : > { %v2460_v55 = vsel %vm295_vm0, %v2457_v24, %v2458_v22  ;;  %v2459_v6 = vrot.slane %v2456_v1, 4 }
 0x1ac   : > { %v2461_v26 = vsel %vm293_vm1, %v2452_v13, %v2460_v55 }
 0x1ad   : > { %2466 = vst [vmem:[#allocation3 + $0xd0] sm:$0x33] %v2461_v26  ;;  %v2462_v29 = vsel %vm295_vm0, %v2458_v22, %v2459_v6 }
 0x1ae   : > { %v2463_v14 = vsel %vm293_vm1, %v2454_v21, %v2462_v29 }
 0x1af   : > { %2467 = vst [vmem:[#allocation3 + $0xd8] sm:$0x33] %v2463_v14 }
 0x1b4   : > { %v3110_v31 = vld [vmem:[#allocation3 + $0xc4] ss:$16 sps:$4 sm:$0x3f]   ;;  %v3112_v15 = vld [vmem:[#allocation3 + $0xc0] ss:$16 sps:$4 sm:$0x3f]  }
 0x1b5   : > { %2956 = vmatprep.subr.msk.bf16.mxu0 %vm2637_vm2, %v3110_v31  ;;  %v2639_v2 = vsel %vm2637_vm2, %v3112_v15, 0 }
 0x1b6   : > { %v3113_v28 = vld [vmem:[#allocation3 + $0xcc] ss:$16 sps:$4 sm:$0x3f]   ;;  %v3115_v40 = vld [vmem:[#allocation3 + $0xc8] ss:$16 sps:$4 sm:$0x3f]   ;;  %2663 = vmatpush1.bf16.msra.mxu0 %v2639_v2 }
 0x1b7   : > { %2958 = vmatprep.subr.msk.bf16.mxu1 %vm2637_vm2, %v3113_v28  ;;  %v2645_v50 = vsel %vm2637_vm2, %v3115_v40, 0 }
 0x1b8   : > { %2704 = vmatpush1.bf16.msra.mxu1 %v2645_v50 }
 0x1b9   : > { %2957 = vmatmul.mubr.msk.bf16.vlgmr.msra.gmra.mrb[0].mxu0 %vm2633_vm3, %v2468_v37 }
 0x1bb   : > { %2959 = vmatmul.mubr.msk.bf16.vlgmr.msra.gmra.mrb[0].mxu1 %vm2633_vm3, %v2468_v37 }
 0x28c   : > { %v2684_v41 = vpop.f32.mrb[0].mxu0 }
 0x28d   : > { %v2746_v46 = vrot.slane %v2684_v41, 4  ;;  %v2686_v18 = vpop.f32.mrb[1].mxu0 }
 0x28e   : > { %v2747_v47 = vrot.slane %v2686_v18, 4  ;;  %v2688_v39 = vpop.f32.mrb[2].mxu0  ;;  %v2725_v54 = vpop.f32.mrb[0].mxu1 }
 0x28f   : > { %2754 = vst [vmem:[%s3279_s9] sm:$0xf0] %v2746_v46  ;;  %v2748_v17 = vrot.slane %v2725_v54, 4  ;;  %v2689_v57 = vpop.f32.mrb[3].mxu0  ;;  %v2727_v34 = vpop.f32.mrb[1].mxu1 }
 0x290   : > { %2755 = vst [vmem:[%s3279_s9 + $0x8] sm:$0xf0] %v2747_v47  ;;  %v2749_v36 = vrot.slane %v2727_v34, 4  ;;  %v2729_v49 = vpop.f32.mrb[2].mxu1 }
 0x291   : > { %2756 = vst [vmem:[%s3279_s9 + $0x10] sm:$0xf0] %v2748_v17  ;;  %v2730_v59 = vpop.f32.mrb[3].mxu1 }
 0x292   : > { %2757 = vst [vmem:[%s3279_s9 + $0x18] sm:$0xf0] %v2749_v36 }
 0x293 PF: > { %s15_s18 = sadd.s32 1, %s3124_s18  }
 0x294   : > { %p12_p4 = scmp.ge.s32.totalorder %s15_s18, 4  }
 0x296   :  { %14 = sbr.rel (!%p12_p4) target bundleno = 1 (0x1), region = 96 }

</bundles_post_ra>
